<compile_context>
chip_gen: v7x
topology: tpu7x:2x2x1
jax: 0.10.0
libtpu: 0.0.40
codegen_flags: <defaults>
</compile_context>

<pallas_src>
import functools

import jax
import jax.numpy as jnp
from jax.experimental import pallas as pl
from jax.experimental.pallas import tpu as pltpu


def _round_up(x, m):
    return ((x + m - 1) // m) * m


# ----------------------------------------------------------------------------
# Fused MLP kernel: 4 x (matmul + bias) + 3 x Softplus + log-softmax.
# ----------------------------------------------------------------------------
def kimnet_kernel(x_ref, w1_ref, b1_ref, w2_ref, b2_ref, w3_ref, b3_ref,
                  w4_ref, b4_ref, o_ref, *, compute_dtype):
    # x_ref:  (Bt, Din)    compute_dtype   (batch tile, flattened input)
    # w*_ref: (Fin, Fout)  compute_dtype   (resident in VMEM across the grid)
    # b*_ref: (1, Fout)    float32
    # o_ref:  (Bt, nb_pad) float32         (log-probabilities, lane-dense)

    def dense(h, w_ref, b_ref):
        y = jnp.dot(h.astype(compute_dtype), w_ref[...],
                    preferred_element_type=jnp.float32)
        return y + b_ref[...]

    def softplus(y):
        # Numerically stable softplus in f32: max(y,0) + log1p(exp(-|y|)).
        # exp/log go to the EUP slot; the adds/maximum ride the VPU.
        return jnp.maximum(y, 0.0) + jnp.log1p(jnp.exp(-jnp.abs(y)))

    h = softplus(dense(x_ref[...], w1_ref, b1_ref))
    h = softplus(dense(h, w2_ref, b2_ref))
    h = softplus(dense(h, w3_ref, b3_ref))
    # TODO(synk): nn.Dropout(0.5) is identity in eval mode; training-mode
    # stochastic masking (pltpu.prng_*) is not implemented.
    logits = dense(h, w4_ref, b4_ref)   # padded classes carry a -1e30 bias

    # log-softmax over the (padded) class axis; padded lanes underflow to 0 in
    # the sum, so the real-class results are unaffected.
    m = jnp.max(logits, axis=-1, keepdims=True)
    z = logits - m
    lse = jnp.log(jnp.sum(jnp.exp(z), axis=-1, keepdims=True))
    o_ref[...] = z - lse


# ----------------------------------------------------------------------------
# Wrapper: single pallas_call over batch tiles.
# ----------------------------------------------------------------------------
def kimnet_log_probs(params, x_flat, nb_cls, *, block_b=512,
                     compute_dtype=jnp.bfloat16):
    """Run the fused MLP on (N, bins*marks); return (N, nb_cls) log-probs."""
    n, d_in = x_flat.shape
    nb_pad = params['w4'].shape[1]

    # Batch tile: multiple of 8 sublanes; don't over-pad tiny batches.
    bt = min(block_b, _round_up(n, 16))
    n_pad = _round_up(n, bt)
    xp = jnp.pad(x_flat, ((0, n_pad - n), (0, 0))).astype(compute_dtype)

    w1 = params['w1'].astype(compute_dtype)
    w2 = params['w2'].astype(compute_dtype)
    w3 = params['w3'].astype(compute_dtype)
    w4 = params['w4'].astype(compute_dtype)
    b1, b2, b3, b4 = params['b1'], params['b2'], params['b3'], params['b4']

    def rep(arr):  # weight/bias blocks: full array, same tile every grid step
        return pl.BlockSpec(arr.shape, lambda i: (0, 0))

    flops_per_row = 2 * (d_in * 600 + 600 * 500 + 500 * 400 + 400 * nb_pad)
    cost = pl.CostEstimate(
        flops=n_pad * flops_per_row,
        transcendentals=n_pad * (600 + 500 + 400 + 2 * nb_pad),
        bytes_accessed=(xp.size * xp.dtype.itemsize
                        + sum(a.size * a.dtype.itemsize
                              for a in (w1, b1, w2, b2, w3, b3, w4, b4))
                        + n_pad * nb_pad * 4),
    )

    out = pl.pallas_call(
        functools.partial(kimnet_kernel, compute_dtype=compute_dtype),
        out_shape=jax.ShapeDtypeStruct((n_pad, nb_pad), jnp.float32),
        grid=(n_pad // bt,),
        in_specs=[
            pl.BlockSpec((bt, d_in), lambda i: (i, 0)),
            rep(w1), rep(b1),
            rep(w2), rep(b2),
            rep(w3), rep(b3),
            rep(w4), rep(b4),
        ],
        out_specs=pl.BlockSpec((bt, nb_pad), lambda i: (i, 0)),
        compiler_params=pltpu.CompilerParams(
            dimension_semantics=("parallel",)),
        cost_estimate=cost,
    )(xp, w1, b1, w2, b2, w3, b3, w4, b4)
    return out[:n, :nb_cls]


# ----------------------------------------------------------------------------
# Full KimNet forward (matches PyTorch module semantics, eval-mode dropout)
# ----------------------------------------------------------------------------
def kimnet_forward(params, histone_forward, histone_reverse=None, *,
                   bins=20, marks=3, nb_cls=5, compute_dtype=jnp.bfloat16):
    d_in = bins * marks
    x_f = jnp.asarray(histone_forward, jnp.float32).reshape(-1, d_in)

    if histone_reverse is None:
        return kimnet_log_probs(params, x_f, nb_cls,
                                compute_dtype=compute_dtype)

    # Two-strand path: run BOTH strands through one pallas_call (weights are
    # streamed once), then average probabilities stably in log space:
    #   log(0.5*(p1+p2)) = logaddexp(logp1, logp2) - log(2).
    x_r = jnp.asarray(histone_reverse, jnp.float32).reshape(-1, d_in)
    n = x_f.shape[0]
    logp_all = kimnet_log_probs(params, jnp.concatenate([x_f, x_r], axis=0),
                                nb_cls, compute_dtype=compute_dtype)
    logp_f, logp_r = logp_all[:n], logp_all[n:]
    return jnp.logaddexp(logp_f, logp_r) - jnp.log(2.0)


# ----------------------------------------------------------------------------
# Pure-JAX reference (for a sanity check) and deterministic parameter init
# ----------------------------------------------------------------------------
def reference_forward(params, histone_forward, histone_reverse=None, *,
                      bins=20, marks=3, nb_cls=5):
    w1, w2, w3 = params['w1'], params['w2'], params['w3']
    b1, b2, b3 = params['b1'], params['b2'], params['b3']
    w4 = params['w4'][:, :nb_cls]
    b4 = params['b4'][:, :nb_cls]

    def run(x):
        h = jnp.asarray(x, jnp.float32).reshape(-1, bins * marks)
        h = jax.nn.softplus(h @ w1 + b1)
        h = jax.nn.softplus(h @ w2 + b2)
        h = jax.nn.softplus(h @ w3 + b3)
        return jax.nn.softmax(h @ w4 + b4, axis=-1)

    p = run(histone_forward)
    if histone_reverse is not None:
        p = 0.5 * (p + run(histone_reverse))
    return jnp.log(p)


def init_params(key, bins=20, marks=3, nb_cls=5, nb_pad=128):
    """torch.nn.Linear-style init; weights stored as (fan_in, fan_out)."""
    d_in = bins * marks

    def linear(k, fan_in, fan_out):
        kw, kb = jax.random.split(k)
        bound = 1.0 / (fan_in ** 0.5)
        w = jax.random.uniform(kw, (fan_in, fan_out), jnp.float32, -bound, bound)
        b = jax.random.uniform(kb, (1, fan_out), jnp.float32, -bound, bound)
        return w, b

    keys = jax.random.split(key, 4)
    p = {}
    p['w1'], p['b1'] = linear(keys[0], d_in, 600)
    p['w2'], p['b2'] = linear(keys[1], 600, 500)
    p['w3'], p['b3'] = linear(keys[2], 500, 400)
    w4, b4 = linear(keys[3], 400, nb_cls)
    # Pad the class axis to a full 128-lane vreg so the kernel's only HBM
    # store is lane-dense; padded classes get a -1e30 bias -> softmax weight 0.
    nb_pad = max(nb_pad, nb_cls)
    p['w4'] = jnp.pad(w4, ((0, 0), (0, nb_pad - nb_cls)))
    p['b4'] = jnp.pad(b4, ((0, 0), (0, nb_pad - nb_cls)), constant_values=-1e30)
    return p


if __name__ == "__main__":
    key = jax.random.PRNGKey(0)
    k_param, k_x = jax.random.split(key)

    bins, marks, nb_cls = 20, 3, 5
    N = 2
    params = init_params(k_param, bins=bins, marks=marks, nb_cls=nb_cls)

    histone_forward = jax.random.normal(k_x, (N, marks, bins), jnp.float32)
    histone_reverse = histone_forward[:, :, ::-1]   # reverse-strand input

    out_fwd = kimnet_forward(params, histone_forward,
                             bins=bins, marks=marks, nb_cls=nb_cls)
    out_both = kimnet_forward(params, histone_forward, histone_reverse,
                              bins=bins, marks=marks, nb_cls=nb_cls)
    jax.block_until_ready(out_fwd)
    jax.block_until_ready(out_both)

    assert out_fwd.shape == (N, nb_cls)
    assert out_both.shape == (N, nb_cls)

    # Sanity check vs pure-JAX reference (loose tolerance: bf16 matmul operands).
    ref_fwd = reference_forward(params, histone_forward,
                                bins=bins, marks=marks, nb_cls=nb_cls)
    ref_both = reference_forward(params, histone_forward, histone_reverse,
                                 bins=bins, marks=marks, nb_cls=nb_cls)
    assert jnp.allclose(out_fwd, ref_fwd, atol=0.1, rtol=0.05)
    assert jnp.allclose(out_both, ref_both, atol=0.1, rtol=0.05)
    assert bool(jnp.all(jnp.isfinite(out_fwd)))
    assert bool(jnp.all(jnp.isfinite(out_both)))

    print("KERNEL_OK")
</pallas_src>

<mosaic_0001>
module attributes {stable_mosaic.version = 11 : i64} {
  func.func @kimnet_kernel(%arg0: i32, %arg1: memref<16x60xbf16, #tpu.memory_space<vmem>>, %arg2: memref<60x600xbf16, #tpu.memory_space<vmem>>, %arg3: memref<1x600xf32, #tpu.memory_space<vmem>>, %arg4: memref<600x500xbf16, #tpu.memory_space<vmem>>, %arg5: memref<1x500xf32, #tpu.memory_space<vmem>>, %arg6: memref<500x400xbf16, #tpu.memory_space<vmem>>, %arg7: memref<1x400xf32, #tpu.memory_space<vmem>>, %arg8: memref<400x128xbf16, #tpu.memory_space<vmem>>, %arg9: memref<1x128xf32, #tpu.memory_space<vmem>>, %arg10: memref<16x128xf32, #tpu.memory_space<vmem>>) attributes {dimension_semantics = [#tpu.dimension_semantics<parallel>], iteration_bounds = array<i64: 1>, scalar_prefetch = 0 : i64, scratch_operands = 0 : i64, tpu.core_type = #tpu.core_type<tc>, window_params = [{transform_indices = @transform_0, window_bounds = array<i64: 16, 60>}, {pipeline_mode = #tpu.pipeline_mode<synchronous>, transform_indices = @transform_1, window_bounds = array<i64: 60, 600>}, {pipeline_mode = #tpu.pipeline_mode<synchronous>, transform_indices = @transform_2, window_bounds = array<i64: 1, 600>}, {pipeline_mode = #tpu.pipeline_mode<synchronous>, transform_indices = @transform_3, window_bounds = array<i64: 600, 500>}, {pipeline_mode = #tpu.pipeline_mode<synchronous>, transform_indices = @transform_4, window_bounds = array<i64: 1, 500>}, {pipeline_mode = #tpu.pipeline_mode<synchronous>, transform_indices = @transform_5, window_bounds = array<i64: 500, 400>}, {pipeline_mode = #tpu.pipeline_mode<synchronous>, transform_indices = @transform_6, window_bounds = array<i64: 1, 400>}, {pipeline_mode = #tpu.pipeline_mode<synchronous>, transform_indices = @transform_7, window_bounds = array<i64: 400, 128>}, {pipeline_mode = #tpu.pipeline_mode<synchronous>, transform_indices = @transform_8, window_bounds = array<i64: 1, 128>}, {transform_indices = @transform_9, window_bounds = array<i64: 16, 128>}]} {
    %c0 = arith.constant 0 : index
    %c0_0 = arith.constant 0 : index
    %0 = vector.load %arg1[%c0, %c0_0] : memref<16x60xbf16, #tpu.memory_space<vmem>>, vector<16x60xbf16>
    %c0_1 = arith.constant 0 : index
    %c0_2 = arith.constant 0 : index
    %1 = vector.load %arg2[%c0_1, %c0_2] : memref<60x600xbf16, #tpu.memory_space<vmem>>, vector<60x600xbf16>
    %cst = arith.constant dense<0.000000e+00> : vector<16x600xf32>
    %2 = tpu.matmul %0, %1, %cst {dimension_numbers = #tpu.dot_dimension_numbers<[1], [0], [0], [1], [0, 0, 1, 1], [], []>} : vector<16x60xbf16>, vector<60x600xbf16>, vector<16x600xf32> -> vector<16x600xf32>
    %c0_3 = arith.constant 0 : index
    %c0_4 = arith.constant 0 : index
    %3 = vector.load %arg3[%c0_3, %c0_4] : memref<1x600xf32, #tpu.memory_space<vmem>>, vector<1x600xf32>
    %4 = vector.broadcast %3 : vector<1x600xf32> to vector<16x600xf32>
    %5 = arith.addf %2, %4 : vector<16x600xf32>
    %cst_5 = arith.constant 0.000000e+00 : f32
    %6 = vector.broadcast %cst_5 : f32 to vector<16x600xf32>
    %7 = arith.maximumf %5, %6 : vector<16x600xf32>
    %8 = math.absf %5 : vector<16x600xf32>
    %cst_6 = arith.constant 0.000000e+00 : f32
    %9 = vector.broadcast %cst_6 : f32 to vector<16x600xf32>
    %10 = arith.subf %9, %8 : vector<16x600xf32>
    %11 = math.exp %10 : vector<16x600xf32>
    %12 = math.log1p %11 : vector<16x600xf32>
    %13 = arith.addf %7, %12 : vector<16x600xf32>
    %14 = arith.truncf %13 : vector<16x600xf32> to vector<16x600xbf16>
    %c0_7 = arith.constant 0 : index
    %c0_8 = arith.constant 0 : index
    %15 = vector.load %arg4[%c0_7, %c0_8] : memref<600x500xbf16, #tpu.memory_space<vmem>>, vector<600x500xbf16>
    %cst_9 = arith.constant dense<0.000000e+00> : vector<16x500xf32>
    %16 = tpu.matmul %14, %15, %cst_9 {dimension_numbers = #tpu.dot_dimension_numbers<[1], [0], [0], [1], [0, 0, 1, 1], [], []>} : vector<16x600xbf16>, vector<600x500xbf16>, vector<16x500xf32> -> vector<16x500xf32>
    %c0_10 = arith.constant 0 : index
    %c0_11 = arith.constant 0 : index
    %17 = vector.load %arg5[%c0_10, %c0_11] : memref<1x500xf32, #tpu.memory_space<vmem>>, vector<1x500xf32>
    %18 = vector.broadcast %17 : vector<1x500xf32> to vector<16x500xf32>
    %19 = arith.addf %16, %18 : vector<16x500xf32>
    %cst_12 = arith.constant 0.000000e+00 : f32
    %20 = vector.broadcast %cst_12 : f32 to vector<16x500xf32>
    %21 = arith.maximumf %19, %20 : vector<16x500xf32>
    %22 = math.absf %19 : vector<16x500xf32>
    %cst_13 = arith.constant 0.000000e+00 : f32
    %23 = vector.broadcast %cst_13 : f32 to vector<16x500xf32>
    %24 = arith.subf %23, %22 : vector<16x500xf32>
    %25 = math.exp %24 : vector<16x500xf32>
    %26 = math.log1p %25 : vector<16x500xf32>
    %27 = arith.addf %21, %26 : vector<16x500xf32>
    %28 = arith.truncf %27 : vector<16x500xf32> to vector<16x500xbf16>
    %c0_14 = arith.constant 0 : index
    %c0_15 = arith.constant 0 : index
    %29 = vector.load %arg6[%c0_14, %c0_15] : memref<500x400xbf16, #tpu.memory_space<vmem>>, vector<500x400xbf16>
    %cst_16 = arith.constant dense<0.000000e+00> : vector<16x400xf32>
    %30 = tpu.matmul %28, %29, %cst_16 {dimension_numbers = #tpu.dot_dimension_numbers<[1], [0], [0], [1], [0, 0, 1, 1], [], []>} : vector<16x500xbf16>, vector<500x400xbf16>, vector<16x400xf32> -> vector<16x400xf32>
    %c0_17 = arith.constant 0 : index
    %c0_18 = arith.constant 0 : index
    %31 = vector.load %arg7[%c0_17, %c0_18] : memref<1x400xf32, #tpu.memory_space<vmem>>, vector<1x400xf32>
    %32 = vector.broadcast %31 : vector<1x400xf32> to vector<16x400xf32>
    %33 = arith.addf %30, %32 : vector<16x400xf32>
    %cst_19 = arith.constant 0.000000e+00 : f32
    %34 = vector.broadcast %cst_19 : f32 to vector<16x400xf32>
    %35 = arith.maximumf %33, %34 : vector<16x400xf32>
    %36 = math.absf %33 : vector<16x400xf32>
    %cst_20 = arith.constant 0.000000e+00 : f32
    %37 = vector.broadcast %cst_20 : f32 to vector<16x400xf32>
    %38 = arith.subf %37, %36 : vector<16x400xf32>
    %39 = math.exp %38 : vector<16x400xf32>
    %40 = math.log1p %39 : vector<16x400xf32>
    %41 = arith.addf %35, %40 : vector<16x400xf32>
    %42 = arith.truncf %41 : vector<16x400xf32> to vector<16x400xbf16>
    %c0_21 = arith.constant 0 : index
    %c0_22 = arith.constant 0 : index
    %43 = vector.load %arg8[%c0_21, %c0_22] : memref<400x128xbf16, #tpu.memory_space<vmem>>, vector<400x128xbf16>
    %cst_23 = arith.constant dense<0.000000e+00> : vector<16x128xf32>
    %44 = tpu.matmul %42, %43, %cst_23 {dimension_numbers = #tpu.dot_dimension_numbers<[1], [0], [0], [1], [0, 0, 1, 1], [], []>} : vector<16x400xbf16>, vector<400x128xbf16>, vector<16x128xf32> -> vector<16x128xf32>
    %c0_24 = arith.constant 0 : index
    %c0_25 = arith.constant 0 : index
    %45 = vector.load %arg9[%c0_24, %c0_25] : memref<1x128xf32, #tpu.memory_space<vmem>>, vector<1x128xf32>
    %46 = vector.broadcast %45 : vector<1x128xf32> to vector<16x128xf32>
    %47 = arith.addf %44, %46 : vector<16x128xf32>
    %cst_26 = arith.constant dense<0xFF800000> : vector<16xf32>
    %48 = vector.multi_reduction <maximumf>, %47, %cst_26 [1] : vector<16x128xf32> to vector<16xf32>
    %49 = vector.shape_cast %48 : vector<16xf32> to vector<16x1xf32>
    %50 = vector.broadcast %49 : vector<16x1xf32> to vector<16x128xf32>
    %51 = arith.subf %47, %50 : vector<16x128xf32>
    %52 = math.exp %51 : vector<16x128xf32>
    %cst_27 = arith.constant dense<0.000000e+00> : vector<16xf32>
    %53 = vector.multi_reduction <add>, %52, %cst_27 [1] : vector<16x128xf32> to vector<16xf32>
    %54 = vector.shape_cast %53 : vector<16xf32> to vector<16x1xf32>
    %55 = math.log %54 : vector<16x1xf32>
    %56 = vector.broadcast %55 : vector<16x1xf32> to vector<16x128xf32>
    %57 = arith.subf %51, %56 : vector<16x128xf32>
    %c0_28 = arith.constant 0 : index
    %c0_29 = arith.constant 0 : index
    %58 = vector.load %arg10[%c0_28, %c0_29] : memref<16x128xf32, #tpu.memory_space<vmem>>, vector<16x128xf32>
    tpu.vector_store %arg10[%c0_28, %c0_29], %57 {strides = array<i32>} : memref<16x128xf32, #tpu.memory_space<vmem>>, vector<16x128xf32>,
    return
  }
  func.func @transform_0(%arg0: i32) -> (i32, i32) {
    %c0_i32 = arith.constant 0 : i32
    %c0_i32_0 = arith.constant 0 : i32
    return %arg0, %c0_i32 : i32, i32
  }
  func.func @transform_1(%arg0: i32) -> (i32, i32) {
    %c0_i32 = arith.constant 0 : i32
    %c0_i32_0 = arith.constant 0 : i32
    %c0_i32_1 = arith.constant 0 : i32
    return %c0_i32, %c0_i32_0 : i32, i32
  }
  func.func @transform_2(%arg0: i32) -> (i32, i32) {
    %c0_i32 = arith.constant 0 : i32
    %c0_i32_0 = arith.constant 0 : i32
    %c0_i32_1 = arith.constant 0 : i32
    return %c0_i32, %c0_i32_0 : i32, i32
  }
  func.func @transform_3(%arg0: i32) -> (i32, i32) {
    %c0_i32 = arith.constant 0 : i32
    %c0_i32_0 = arith.constant 0 : i32
    %c0_i32_1 = arith.constant 0 : i32
    return %c0_i32, %c0_i32_0 : i32, i32
  }
  func.func @transform_4(%arg0: i32) -> (i32, i32) {
    %c0_i32 = arith.constant 0 : i32
    %c0_i32_0 = arith.constant 0 : i32
    %c0_i32_1 = arith.constant 0 : i32
    return %c0_i32, %c0_i32_0 : i32, i32
  }
  func.func @transform_5(%arg0: i32) -> (i32, i32) {
    %c0_i32 = arith.constant 0 : i32
    %c0_i32_0 = arith.constant 0 : i32
    %c0_i32_1 = arith.constant 0 : i32
    return %c0_i32, %c0_i32_0 : i32, i32
  }
  func.func @transform_6(%arg0: i32) -> (i32, i32) {
    %c0_i32 = arith.constant 0 : i32
    %c0_i32_0 = arith.constant 0 : i32
    %c0_i32_1 = arith.constant 0 : i32
    return %c0_i32, %c0_i32_0 : i32, i32
  }
  func.func @transform_7(%arg0: i32) -> (i32, i32) {
    %c0_i32 = arith.constant 0 : i32
    %c0_i32_0 = arith.constant 0 : i32
    %c0_i32_1 = arith.constant 0 : i32
    return %c0_i32, %c0_i32_0 : i32, i32
  }
  func.func @transform_8(%arg0: i32) -> (i32, i32) {
    %c0_i32 = arith.constant 0 : i32
    %c0_i32_0 = arith.constant 0 : i32
    %c0_i32_1 = arith.constant 0 : i32
    return %c0_i32, %c0_i32_0 : i32, i32
  }
  func.func @transform_9(%arg0: i32) -> (i32, i32) {
    %c0_i32 = arith.constant 0 : i32
    %c0_i32_0 = arith.constant 0 : i32
    return %arg0, %c0_i32 : i32, i32
  }
}

</mosaic_0001>

<bundles_post_ra>
// kernel: tpu_custom_call.1
= control target key start
LH: loop header
LB: loop body
LE: loop exit
PB: predicated region body
PF: predicated region fallthrough
CT: control target
= control target key end

     0   :  { %v4268_v2 = vmov 0   ;;  %v4269_v4 = vmov 0.0   ;;  %vm4270_vm0 = vmmov 0   ;;  %vm195_vm1 = vcmask 1045504   ;;  %s5695_s0 = inlined_call_operand.vmem [shape: bf16[16,60], index: 0, kind: input, shape index: {}]   ;;  %s5696_s1 = inlined_call_operand.vmem [shape: bf16[60,600], index: 1, kind: input, shape index: {}]   ;;  %s5697_s2 = inlined_call_operand.vmem [shape: f32[1,600], index: 2, kind: input, shape index: {}]   ;;  %s5698_s3 = inlined_call_operand.vmem [shape: bf16[600,500], index: 3, kind: input, shape index: {}]   ;;  %s5699_s4 = inlined_call_operand.vmem [shape: f32[1,500], index: 4, kind: input, shape index: {}]   ;;  %s5700_s5 = inlined_call_operand.vmem [shape: bf16[500,400], index: 5, kind: input, shape index: {}]   ;;  %s5701_s6 = inlined_call_operand.vmem [shape: f32[1,400], index: 6, kind: input, shape index: {}]   ;;  %s5702_s7 = inlined_call_operand.vmem [shape: bf16[400,128], index: 7, kind: input, shape index: {}]   ;;  %s5703_s8 = inlined_call_operand.vmem [shape: f32[1,128], index: 8, kind: input, shape index: {}]   ;;  %s5704_s9 = inlined_call_operand.hbm [shape: f32[16,128], index: 9, kind: output, shape index: {}]  }
   0x1   :  { %v3662_v0 = vld [vmem:[%s5696_s1 + $0x4] ss:$20 sps:$4 sm:$0xff]   ;;  %v3664_v1 = vld [vmem:[%s5696_s1] ss:$20 sps:$4 sm:$0xff]   ;;  %243 = vmatprep.mubr.bf16.mxu1 %v4268_v2  ;;  %3604 = vmatprep.subr.bf16.mxu0 %v4269_v4  ;;  %v3667_v5 = vld [vmem:[%s5696_s1 + $0x28] ss:$20 sps:$4 sm:$0xff]  }
   0x2   :  { %211 = vmatprep.subr.bf16.mxu1 %v3662_v0  ;;  %v3665_v3 = vld [vmem:[%s5696_s1 + $0x2c] ss:$20 sps:$4 sm:$0xff]   ;;  %3612 = vmatprep.mubr.msk.bf16.mxu0 %vm4270_vm0, %v4269_v4  ;;  %v3668_v6 = vld [vmem:[%s5696_s1 + $0x54] ss:$20 sps:$4 sm:$0xff]   ;;  %v3670_v7 = vld [vmem:[%s5696_s1 + $0x50] ss:$20 sps:$4 sm:$0xff]  }
   0x3   :  { %212 = vmatpush1.bf16.msra.mxu1 %v3664_v1  ;;  %v3673_v8 = vld [vmem:[%s5696_s1 + $0x78] ss:$20 sps:$4 sm:$0x3f]   ;;  %v3671_v9 = vld [vmem:[%s5696_s1 + $0x7c] ss:$20 sps:$4 sm:$0x3f]  }
   0x4   :  { %213 = vmatprep.subr.bf16.mxu1 %v3665_v3  ;;  %v197_v10 = vsel %vm195_vm1, %v3673_v8, 0  ;;  %v3677_v11 = vld [vmem:[%s5696_s1 + $0xc] ss:$20 sps:$4 sm:$0xff]   ;;  %v3687_v13 = vld [vmem:[%s5696_s1 + $0x10] ss:$20 sps:$4 sm:$0xff]   ;;  %vm191_vm2 = vcmask 490496  }
   0x5   :  { %v3674_v12 = vld [vmem:[%s5695_s0] sm:$0xff]   ;;  %3605 = vmatpush3.bf16.msra.mxu0 %v3687_v13  ;;  %v3688_v14 = vld [vmem:[%s5696_s1 + $0x38] ss:$20 sps:$4 sm:$0xff]   ;;  %v3675_v15 = vld [vmem:[%s5696_s1 + $0x8] ss:$20 sps:$4 sm:$0xff]  }
   0x6   :  { %3606 = vmatprep.subr.bf16.mxu0 %v4269_v4  ;;  %v3680_v16 = vld [vmem:[%s5696_s1 + $0x34] ss:$20 sps:$4 sm:$0xff]   ;;  %v3678_v18 = vld [vmem:[%s5696_s1 + $0x30] ss:$20 sps:$4 sm:$0xff]   ;;  %v3681_v22 = vld [vmem:[%s5696_s1 + $0x58] ss:$20 sps:$4 sm:$0xff]  }
   0x7   :  { %214 = vmatpush1.bf16.msra.mxu1 %v3667_v5  ;;  %v3689_v17 = vld [vmem:[%s5696_s1 + $0x60] ss:$20 sps:$4 sm:$0xff]   ;;  %v3690_v19 = vld [vmem:[%s5696_s1 + $0x88] ss:$20 sps:$4 sm:$0x3f]  }
   0x8   :  { %215 = vmatprep.subr.bf16.mxu1 %v3668_v6  ;;  %v3683_v20 = vld [vmem:[%s5696_s1 + $0x5c] ss:$20 sps:$4 sm:$0xff]   ;;  %v3684_v21 = vld [vmem:[%s5696_s1 + $0x84] ss:$20 sps:$4 sm:$0x3f]   ;;  %v209_v23 = vsel %vm195_vm1, %v3690_v19, 0 }
   0x9   :  { %3607 = vmatpush3.bf16.msra.mxu0 %v3688_v14  ;;  %v3696_v24 = vld [vmem:[%s5698_s3 + $0xc] ss:$16 sps:$4 sm:$0xff]   ;;  %v3686_v25 = vld [vmem:[%s5696_s1 + $0x80] ss:$20 sps:$4 sm:$0x3f]  }
   0xa   :  { %3608 = vmatprep.subr.bf16.mxu0 %v4269_v4  ;;  %v3694_v26 = vld [vmem:[%s5698_s3 + $0x8] ss:$16 sps:$4 sm:$0xff]   ;;  %v3702_v27 = vld [vmem:[%s5698_s3 + $0x2c] ss:$16 sps:$4 sm:$0xff]   ;;  %v203_v28 = vsel %vm195_vm1, %v3686_v25, 0 }
   0xb   :  { %216 = vmatpush1.bf16.msra.mxu1 %v3670_v7  ;;  %v3693_v29 = vld [vmem:[%s5698_s3 + $0x4] ss:$16 sps:$4 sm:$0xff]   ;;  %v3691_v30 = vld [vmem:[%s5698_s3] ss:$16 sps:$4 sm:$0xff]   ;;  %v3700_v31 = vld [vmem:[%s5698_s3 + $0x28] ss:$16 sps:$4 sm:$0xff]  }
   0xc   :  { %3257 = vmatprep.subr.msk.bf16.mxu1 %vm195_vm1, %v3671_v9  ;;  %v3699_v32 = vld [vmem:[%s5698_s3 + $0x24] ss:$16 sps:$4 sm:$0xff]   ;;  %v3708_v33 = vld [vmem:[%s5698_s3 + $0x4c] ss:$16 sps:$4 sm:$0xff]   ;;  %v3706_v34 = vld [vmem:[%s5698_s3 + $0x48] ss:$16 sps:$4 sm:$0xff]  }
   0xd   :  { %3609 = vmatpush3.bf16.msra.mxu0 %v3689_v17  ;;  %v3697_v35 = vld [vmem:[%s5698_s3 + $0x20] ss:$16 sps:$4 sm:$0xff]   ;;  %v3714_v36 = vld [vmem:[%s5698_s3 + $0x6c] ss:$16 sps:$4 sm:$0xff]   ;;  %v3705_v37 = vld [vmem:[%s5698_s3 + $0x44] ss:$16 sps:$4 sm:$0xff]  }
   0xe   :  { %3610 = vmatprep.subr.bf16.mxu0 %v4269_v4  ;;  %v3712_v38 = vld [vmem:[%s5698_s3 + $0x68] ss:$16 sps:$4 sm:$0xff]   ;;  %v3703_v39 = vld [vmem:[%s5698_s3 + $0x40] ss:$16 sps:$4 sm:$0xff]   ;;  %v3720_v40 = vld [vmem:[%s5698_s3 + $0x8c] ss:$16 sps:$4 sm:$0xff]  }
   0xf   :  { %218 = vmatpush1.bf16.msra.mxu1 %v197_v10  ;;  %v3711_v41 = vld [vmem:[%s5698_s3 + $0x64] ss:$16 sps:$4 sm:$0xff]   ;;  %v3718_v42 = vld [vmem:[%s5698_s3 + $0x88] ss:$16 sps:$4 sm:$0xff]   ;;  %v3709_v43 = vld [vmem:[%s5698_s3 + $0x60] ss:$16 sps:$4 sm:$0xff]  }
  0x10   :  { %254 = vmatprep.subr.bf16.mxu1 %v3677_v11  ;;  %v3726_v44 = vld [vmem:[%s5698_s3 + $0xac] ss:$16 sps:$4 sm:$0xff]   ;;  %v3717_v45 = vld [vmem:[%s5698_s3 + $0x84] ss:$16 sps:$4 sm:$0xff]   ;;  %v3724_v46 = vld [vmem:[%s5698_s3 + $0xa8] ss:$16 sps:$4 sm:$0xff]  }
  0x11   :  { %3611 = vmatpush3.bf16.msra.mxu0 %v209_v23  ;;  %v3715_v47 = vld [vmem:[%s5698_s3 + $0x80] ss:$16 sps:$4 sm:$0xff]   ;;  %v3723_v48 = vld [vmem:[%s5698_s3 + $0xa4] ss:$16 sps:$4 sm:$0xff]   ;;  %v3732_v51 = vld [vmem:[%s5698_s3 + $0xcc] ss:$16 sps:$4 sm:$0xff]  }
  0x12   :  { %3258 = vmatmul.mubr.msk.bf16.vlgmr.msra.gmra.mrb[0].mxu1 %vm191_vm2, %v3674_v12  ;;  %1561 = vmatprep.subr.bf16.mxu0 %v3696_v24  ;;  %v3721_v49 = vld [vmem:[%s5698_s3 + $0xa0] ss:$16 sps:$4 sm:$0xff]   ;;  %v3729_v50 = vld [vmem:[%s5698_s3 + $0xc4] ss:$16 sps:$4 sm:$0xff]   ;;  %v3730_v53 = vld [vmem:[%s5698_s3 + $0xc8] ss:$16 sps:$4 sm:$0xff]  }
  0x13   :  { %255 = vmatpush1.bf16.msra.mxu1 %v3675_v15  ;;  %286 = vmatprep.mubr.bf16.mxu1 %v4268_v2  ;;  %v3727_v52 = vld [vmem:[%s5698_s3 + $0xc0] ss:$16 sps:$4 sm:$0xff]   ;;  %v3735_v54 = vld [vmem:[%s5698_s3 + $0xe4] ss:$16 sps:$4 sm:$0xff]   ;;  %v3738_v55 = vld [vmem:[%s5698_s3 + $0xec] ss:$16 sps:$4 sm:$0xff]  }
  0x14   :  { %256 = vmatprep.subr.bf16.mxu1 %v3680_v16  ;;  %3613 = vmatmul.mubr.msk.bf16.vlgmr.msra.gmra.mrb[0].mxu0 %vm191_vm2, %v3674_v12  ;;  %v3733_v56 = vld [vmem:[%s5698_s3 + $0xe0] ss:$16 sps:$4 sm:$0xff]   ;;  %v3736_v57 = vld [vmem:[%s5698_s3 + $0xe8] ss:$16 sps:$4 sm:$0xff]   ;;  %v3741_v58 = vld [vmem:[%s5698_s3 + $0x104] ss:$16 sps:$4 sm:$0xff]  }
  0x15   :  { %1562 = vmatpush1.bf16.msra.mxu0 %v3694_v26  ;;  %v3744_v59 = vld [vmem:[%s5698_s3 + $0x10c] ss:$16 sps:$4 sm:$0xff]   ;;  %v3739_v60 = vld [vmem:[%s5698_s3 + $0x100] ss:$16 sps:$4 sm:$0xff]   ;;  %v3742_v61 = vld [vmem:[%s5698_s3 + $0x108] ss:$16 sps:$4 sm:$0xff]  }
  0x16   :  { %1563 = vmatprep.subr.bf16.mxu0 %v3702_v27  ;;  %v3747_v62 = vld [vmem:[%s5698_s3 + $0x124] ss:$16 sps:$4 sm:$0xff]   ;;  %v3750_v63 = vld [vmem:[%s5698_s3 + $0x12c] ss:$16 sps:$4 sm:$0xff]   ;;  %v3745_v0 = vld [vmem:[%s5698_s3 + $0x120] ss:$16 sps:$4 sm:$0xff]  }
  0x17   :  { %257 = vmatpush1.bf16.msra.mxu1 %v3678_v18  ;;  %v3748_v1 = vld [vmem:[%s5698_s3 + $0x128] ss:$16 sps:$4 sm:$0xff]   ;;  %v3753_v3 = vld [vmem:[%s5698_s3 + $0x144] ss:$16 sps:$4 sm:$0xff]   ;;  %v3756_v4 = vld [vmem:[%s5698_s3 + $0x14c] ss:$16 sps:$4 sm:$0xff]  }
  0x18   :  { %258 = vmatprep.subr.bf16.mxu1 %v3683_v20  ;;  %v3751_v5 = vld [vmem:[%s5698_s3 + $0x140] ss:$16 sps:$4 sm:$0xff]   ;;  %v3754_v6 = vld [vmem:[%s5698_s3 + $0x148] ss:$16 sps:$4 sm:$0xff]   ;;  %v3759_v7 = vld [vmem:[%s5698_s3 + $0x164] ss:$16 sps:$4 sm:$0xff]  }
  0x19   :  { %1564 = vmatpush1.bf16.msra.mxu0 %v3700_v31  ;;  %v3762_v8 = vld [vmem:[%s5698_s3 + $0x16c] ss:$16 sps:$4 sm:$0xff]   ;;  %v3757_v9 = vld [vmem:[%s5698_s3 + $0x160] ss:$16 sps:$4 sm:$0xff]   ;;  %v3760_v10 = vld [vmem:[%s5698_s3 + $0x168] ss:$16 sps:$4 sm:$0xff]  }
  0x1a   :  { %1565 = vmatprep.subr.bf16.mxu0 %v3708_v33  ;;  %v3765_v11 = vld [vmem:[%s5698_s3 + $0x184] ss:$16 sps:$4 sm:$0xff]   ;;  %v3763_v13 = vld [vmem:[%s5698_s3 + $0x180] ss:$16 sps:$4 sm:$0xff]   ;;  %v3766_v14 = vld [vmem:[%s5698_s3 + $0x188] ss:$16 sps:$4 sm:$0xff]  }
  0x1b   :  { %259 = vmatpush1.bf16.msra.mxu1 %v3681_v22  ;;  %v3771_v15 = vld [vmem:[%s5698_s3 + $0x1a4] ss:$16 sps:$4 sm:$0xff]   ;;  %v3774_v16 = vld [vmem:[%s5698_s3 + $0x1ac] ss:$16 sps:$4 sm:$0xff]   ;;  %v3769_v17 = vld [vmem:[%s5698_s3 + $0x1a0] ss:$16 sps:$4 sm:$0xff]  }
  0x1c   :  { %3259 = vmatprep.subr.msk.bf16.mxu1 %vm195_vm1, %v3684_v21  ;;  %v3772_v18 = vld [vmem:[%s5698_s3 + $0x1a8] ss:$16 sps:$4 sm:$0xff]   ;;  %v3777_v19 = vld [vmem:[%s5698_s3 + $0x1c4] ss:$16 sps:$4 sm:$0xff]   ;;  %v3780_v20 = vld [vmem:[%s5698_s3 + $0x1cc] ss:$16 sps:$4 sm:$0xff]  }
  0x1d   :  { %1566 = vmatpush1.bf16.msra.mxu0 %v3706_v34  ;;  %v3775_v21 = vld [vmem:[%s5698_s3 + $0x1c0] ss:$16 sps:$4 sm:$0xff]   ;;  %v3778_v22 = vld [vmem:[%s5698_s3 + $0x1c8] ss:$16 sps:$4 sm:$0xff]   ;;  %v3783_v23 = vld [vmem:[%s5698_s3 + $0x1e4] ss:$16 sps:$4 sm:$0xff]  }
  0x1e   :  { %1567 = vmatprep.subr.bf16.mxu0 %v3714_v36  ;;  %v3786_v24 = vld [vmem:[%s5698_s3 + $0x1ec] ss:$16 sps:$4 sm:$0xff]   ;;  %v3781_v25 = vld [vmem:[%s5698_s3 + $0x1e0] ss:$16 sps:$4 sm:$0xff]   ;;  %v3784_v26 = vld [vmem:[%s5698_s3 + $0x1e8] ss:$16 sps:$4 sm:$0xff]  }
  0x1f   :  { %261 = vmatpush1.bf16.msra.mxu1 %v203_v28  ;;  %v3789_v27 = vld [vmem:[%s5698_s3 + $0x204] ss:$16 sps:$4 sm:$0xff]   ;;  %v3792_v28 = vld [vmem:[%s5698_s3 + $0x20c] ss:$16 sps:$4 sm:$0xff]  }
  0x20   :  { %1432 = vmatprep.subr.bf16.mxu1 %v3693_v29 }
  0x21   :  { %1568 = vmatpush1.bf16.msra.mxu0 %v3712_v38 }
  0x22   :  { %3260 = vmatmul.mubr.msk.bf16.vlgmr.msra.gmra.mrb[4].mxu1 %vm191_vm2, %v3674_v12  ;;  %1569 = vmatprep.subr.bf16.mxu0 %v3720_v40  ;;  %v3768_v12 = vld [vmem:[%s5698_s3 + $0x18c] ss:$16 sps:$4 sm:$0xff]  }
  0x23   :  { %1433 = vmatpush1.bf16.msra.mxu1 %v3691_v30 }
  0x24   :  { %1434 = vmatprep.subr.bf16.mxu1 %v3699_v32 }
  0x25   :  { %1570 = vmatpush1.bf16.msra.mxu0 %v3718_v42 }
  0x26   :  { %1571 = vmatprep.subr.bf16.mxu0 %v3726_v44 }
  0x27   :  { %1435 = vmatpush1.bf16.msra.mxu1 %v3697_v35 }
  0x28   :  { %1436 = vmatprep.subr.bf16.mxu1 %v3705_v37 }
  0x29   :  { %1572 = vmatpush1.bf16.msra.mxu0 %v3724_v46 }
  0x2a   :  { %1573 = vmatprep.subr.bf16.mxu0 %v3732_v51 }
  0x2b   :  { %1437 = vmatpush1.bf16.msra.mxu1 %v3703_v39 }
  0x2c   :  { %1438 = vmatprep.subr.bf16.mxu1 %v3711_v41 }
  0x2d   :  { %1574 = vmatpush1.bf16.msra.mxu0 %v3730_v53 }
  0x2e   :  { %1575 = vmatprep.subr.bf16.mxu0 %v3738_v55 }
  0x2f   :  { %1439 = vmatpush1.bf16.msra.mxu1 %v3709_v43 }
  0x30   :  { %1440 = vmatprep.subr.bf16.mxu1 %v3717_v45 }
  0x31   :  { %1576 = vmatpush1.bf16.msra.mxu0 %v3736_v57 }
  0x32   :  { %1577 = vmatprep.subr.bf16.mxu0 %v3744_v59 }
  0x33   :  { %1441 = vmatpush1.bf16.msra.mxu1 %v3715_v47 }
  0x34   :  { %1442 = vmatprep.subr.bf16.mxu1 %v3723_v48 }
  0x35   :  { %1578 = vmatpush1.bf16.msra.mxu0 %v3742_v61 }
  0x36   :  { %1579 = vmatprep.subr.bf16.mxu0 %v3750_v63 }
  0x37   :  { %1443 = vmatpush1.bf16.msra.mxu1 %v3721_v49 }
  0x38   :  { %1444 = vmatprep.subr.bf16.mxu1 %v3729_v50 }
  0x39   :  { %1580 = vmatpush1.bf16.msra.mxu0 %v3748_v1 }
  0x3a   :  { %1581 = vmatprep.subr.bf16.mxu0 %v3756_v4 }
  0x3b   :  { %1445 = vmatpush1.bf16.msra.mxu1 %v3727_v52 }
  0x3c   :  { %1446 = vmatprep.subr.bf16.mxu1 %v3735_v54 }
  0x3d   :  { %1582 = vmatpush1.bf16.msra.mxu0 %v3754_v6 }
  0x3e   :  { %1583 = vmatprep.subr.bf16.mxu0 %v3762_v8 }
  0x3f   :  { %1447 = vmatpush1.bf16.msra.mxu1 %v3733_v56 }
  0x40   :  { %1448 = vmatprep.subr.bf16.mxu1 %v3741_v58 }
  0x41   :  { %1584 = vmatpush1.bf16.msra.mxu0 %v3760_v10 }
  0x42   :  { %1585 = vmatprep.subr.bf16.mxu0 %v3768_v12 }
  0x43   :  { %1449 = vmatpush1.bf16.msra.mxu1 %v3739_v60 }
  0x44   :  { %1450 = vmatprep.subr.bf16.mxu1 %v3747_v62 }
  0x45   :  { %1586 = vmatpush1.bf16.msra.mxu0 %v3766_v14 }
  0x46   :  { %1587 = vmatprep.subr.bf16.mxu0 %v3774_v16 }
  0x47   :  { %1451 = vmatpush1.bf16.msra.mxu1 %v3745_v0 }
  0x48   :  { %1452 = vmatprep.subr.bf16.mxu1 %v3753_v3 }
  0x49   :  { %1588 = vmatpush1.bf16.msra.mxu0 %v3772_v18 }
  0x4a   :  { %1589 = vmatprep.subr.bf16.mxu0 %v3780_v20 }
  0x4b   :  { %1453 = vmatpush1.bf16.msra.mxu1 %v3751_v5 }
  0x4c   :  { %1454 = vmatprep.subr.bf16.mxu1 %v3759_v7 }
  0x4d   :  { %1590 = vmatpush1.bf16.msra.mxu0 %v3778_v22 }
  0x4e   :  { %1591 = vmatprep.subr.bf16.mxu0 %v3786_v24 }
  0x4f   :  { %1455 = vmatpush1.bf16.msra.mxu1 %v3757_v9 }
  0x50   :  { %1456 = vmatprep.subr.bf16.mxu1 %v3765_v11 }
  0x51   :  { %1592 = vmatpush1.bf16.msra.mxu0 %v3784_v26 }
  0x52   :  { %1604 = vmatprep.subr.bf16.mxu0 %v3792_v28 }
  0x53   :  { %1457 = vmatpush1.bf16.msra.mxu1 %v3763_v13 }
  0x54   :  { %1458 = vmatprep.subr.bf16.mxu1 %v3771_v15 }
  0x57   :  { %1459 = vmatpush1.bf16.msra.mxu1 %v3769_v17 }
  0x58   :  { %1460 = vmatprep.subr.bf16.mxu1 %v3777_v19 }
  0x5b   :  { %1461 = vmatpush1.bf16.msra.mxu1 %v3775_v21 }
  0x5c   :  { %1462 = vmatprep.subr.bf16.mxu1 %v3783_v23 }
  0x5f   :  { %1463 = vmatpush1.bf16.msra.mxu1 %v3781_v25 }
  0x60   :  { %1475 = vmatprep.subr.bf16.mxu1 %v3789_v27 }
  0x61   :  { %14 = vsyncpa [#allocation3], 0  ;;  %v62_v29 = vlaneseq  ;;  %v60_v32 = vld [vmem:[%s5697_s2] sm:$0x1f]  ;;  %vm1419_vm13 = vcmask 1043456   ;;  %vm1415_vm14 = vcmask 719872  }
  0x63   :  { %v63_v30 = vshrl.u32 %v62_v29, 7 }
  0x65   :  { %v4595_v31 = vsub.s32 0, %v63_v30  ;;  %v4600_v33 = vsub.s32 1, %v63_v30  ;;  %v80_v48 = vsub.s32 4, %v63_v30  ;;  %v4616_v56 = vsub.s32 2, %v63_v30 }
  0x66   :  { %v4621_v0 = vsub.s32 3, %v63_v30 }
  0x67   :  { %v65_v34 = vrot.slane %v60_v32, %v4595_v31  ;;  %v69_v35 = vrot.slane %v60_v32, %v4600_v33  ;;  %v81_v57 = vrot.slane %v60_v32, %v80_v48  ;;  %v73_v61 = vrot.slane %v60_v32, %v4616_v56 }
  0x68   :  { %v77_v8 = vrot.slane %v60_v32, %v4621_v0 }
  0xe5   :  { %v245_v36 = vpop.f32.mrb[0].mxu1 }
  0xe6   :  { %v4604_v37 = vadd.f32 %v245_v36, %v65_v34  ;;  %v247_v38 = vpop.f32.mrb[1].mxu1 }
  0xe7   :  { %v4606_v39 = vadd.f32 %v247_v38, %v69_v35  ;;  %v249_v40 = vpop.f32.mrb[2].mxu1  ;;  %v331_v59 = vpop.f32.mrb[0].mxu0 }
  0xe8   :  { %v348_v41 = vand.u32 2147483647, %v4604_v37  ;;  %v4609_v42 = vadd.f32 %v249_v40, %v65_v34  ;;  %v251_v43 = vpop.f32.mrb[3].mxu1  ;;  %v3614_v60 = vpop.f32.mrb[1].mxu0  ;;  %v4619_v62 = vadd.f32 %v331_v59, %v81_v57  ;;  %v338_v30 = vmax.f32 %v4604_v37, 0.0 }
  0xe9   :  { %v349_v44 = vand.u32 2147483647, %v4606_v39  ;;  %v4612_v45 = vadd.f32 %v251_v43, %v69_v35  ;;  %v334_v63 = vpop.f32.mrb[2].mxu0 }
  0xea   :  { %v358_v46 = vsub.f32 0.0, %v348_v41  ;;  %v353_v47 = vand.u32 2147483647, %v4609_v42  ;;  %v3615_v1 = vpop.f32.mrb[3].mxu0  ;;  %v352_v6 = vand.u32 2147483647, %v4619_v62  ;;  %v4626_v7 = vadd.f32 %v334_v63, %v81_v57 }
  0xeb   :  { %v359_v49 = vsub.f32 0.0, %v349_v44  ;;  %v354_v50 = vand.u32 2147483647, %v4612_v45 }
  0xec   :  { %v368_v51 = vmul.f32 1.442695, %v358_v46  ;;  %v363_v52 = vsub.f32 0.0, %v353_v47  ;;  %v362_v17 = vsub.f32 0.0, %v352_v6  ;;  %v357_v18 = vand.u32 2147483647, %v4626_v7 }
  0xed   :  { %v370_v53 = vmul.f32 1.442695, %v359_v49  ;;  %v364_v54 = vsub.f32 0.0, %v354_v50  ;;  %v339_v46 = vmax.f32 %v4606_v39, 0.0 }
  0xee   :  { %4132 = vpow2.f32 %v368_v51  ;;  %v378_v55 = vmul.f32 1.442695, %v363_v52  ;;  %v376_v26 = vmul.f32 1.442695, %v362_v17  ;;  %v367_v27 = vsub.f32 0.0, %v357_v18 }
  0xef   :  { %4134 = vpow2.f32 %v370_v53  ;;  %v380_v58 = vmul.f32 1.442695, %v364_v54 }
  0xf0   :  { %4136 = vpow2.f32 %v378_v55  ;;  %v386_v44 = vmul.f32 1.442695, %v367_v27 }
  0xf1   :  { %4138 = vpow2.f32 %v380_v58 }
  0xf5   :  { %v288_v3 = vpop.f32.mrb[4].mxu1 }
  0xf6   :  { %v4623_v4 = vadd.f32 %v288_v3, %v73_v61  ;;  %v290_v5 = vpop.f32.mrb[5].mxu1 }
  0xf7   :  { %v292_v9 = vpop.f32.mrb[6].mxu1  ;;  %v4633_v22 = vadd.f32 %v290_v5, %v77_v8 }
  0xf8   :  { %v4133_v10 = vpop.eup %4132  ;;  %v350_v11 = vand.u32 2147483647, %v4623_v4  ;;  %v294_v12 = vpop.f32.mrb[7].mxu1  ;;  %v4636_v24 = vadd.f32 %v292_v9, %v73_v61 }
  0xf9   :  { %v4135_v13 = vpop.eup %4134  ;;  %v388_v14 = vadd.f32 1.0, %v4133_v10  ;;  %v391_v25 = vmul.f32 -0.5, %v4133_v10  ;;  %v351_v29 = vand.u32 2147483647, %v4633_v22  ;;  %v394_v32 = vand.u32 2147483647, %v4133_v10 }
  0xfa   :  { %v4137_v15 = vpop.eup %4136  ;;  %v397_v16 = vadd.f32 1.0, %v4135_v13  ;;  %v360_v21 = vsub.f32 0.0, %v350_v11  ;;  %v400_v34 = vmul.f32 -0.5, %v4135_v13  ;;  %v355_v38 = vand.u32 2147483647, %v4636_v24 }
  0xfb   :  { %v4631_v19 = vpop.eup %4138  ;;  %4140 = vlog2.f32 %v388_v14  ;;  %v433_v20 = vadd.f32 1.0, %v4137_v15  ;;  %v436_v35 = vmul.f32 -0.5, %v4137_v15  ;;  %v361_v36 = vsub.f32 0.0, %v351_v29 }
  0xfc   :  { %4142 = vlog2.f32 %v397_v16  ;;  %v442_v23 = vadd.f32 1.0, %v4631_v19  ;;  %v372_v28 = vmul.f32 1.442695, %v360_v21  ;;  %v4641_v40 = vadd.f32 %v294_v12, %v77_v8 }
  0xfd   :  { %4144 = vlog2.f32 %v433_v20  ;;  %v392_v41 = vadd.f32 1.0, %v391_v25  ;;  %v445_v43 = vmul.f32 -0.5, %v4631_v19  ;;  %v374_v47 = vmul.f32 1.442695, %v361_v36 }
  0xfe   :  { %4146 = vlog2.f32 %v442_v23  ;;  %v365_v48 = vsub.f32 0.0, %v355_v38  ;;  %v356_v37 = vand.u32 2147483647, %v4641_v40  ;;  %v401_v49 = vadd.f32 1.0, %v400_v34  ;;  %v3790_v34 = vld [vmem:[%s5698_s3 + $0x208] ss:$16 sps:$4 sm:$0xff]  }
  0xff   :  { %4148 = vpow2.f32 %v372_v28  ;;  %v403_v50 = vand.u32 2147483647, %v4135_v13  ;;  %v437_v51 = vadd.f32 1.0, %v436_v35  ;;  %v439_v53 = vand.u32 2147483647, %v4137_v15 }
 0x100   :  { %4150 = vpow2.f32 %v376_v26  ;;  %v382_v54 = vmul.f32 1.442695, %v365_v48  ;;  %v366_v55 = vsub.f32 0.0, %v356_v37  ;;  %v393_v59 = vmul.f32 %v4133_v10, %v392_v41  ;;  %v3795_v38 = vld [vmem:[%s5698_s3 + $0x224] ss:$16 sps:$4 sm:$0xff]  }
 0x101   :  { %4152 = vpow2.f32 %v386_v44  ;;  %vm4646_vm3 = vcmp.lt.f32.partialorder %v394_v32, 0.0004427343  ;;  %v446_v39 = vadd.f32 1.0, %v445_v43  ;;  %v448_v1 = vand.u32 2147483647, %v4631_v19 }
 0x102   :  { %4154 = vpow2.f32 %v374_v47  ;;  %v384_v3 = vmul.f32 1.442695, %v366_v55  ;;  %v402_v6 = vmul.f32 %v4135_v13, %v401_v49  ;;  %v438_v9 = vmul.f32 %v4137_v15, %v437_v51  ;;  %v3798_v41 = vld [vmem:[%s5698_s3 + $0x22c] ss:$16 sps:$4 sm:$0xff]   ;;  %v3796_v51 = vld [vmem:[%s5698_s3 + $0x228] ss:$16 sps:$4 sm:$0xff]  }
 0x103   :  { %4156 = vpow2.f32 %v382_v54  ;;  %vm4653_vm4 = vcmp.lt.f32.partialorder %v403_v50, 0.0004427343  ;;  %v343_v12 = vmax.f32 %v4609_v42, 0.0  ;;  %vm440_vm5 = vcmp.lt.f32.partialorder %v439_v53, 0.0004427343 }
 0x104   :  { %4158 = vpow2.f32 %v384_v3  ;;  %v447_v18 = vmul.f32 %v4631_v19, %v446_v39  ;;  %v344_v21 = vmax.f32 %v4612_v45, 0.0  ;;  %vm449_vm6 = vcmp.lt.f32.partialorder %v448_v1, 0.0004427343  ;;  %v3787_v45 = vld [vmem:[%s5698_s3 + $0x200] ss:$16 sps:$4 sm:$0xff]  }
 0x105   :  { %v4141_v52 = vpop.eup %4140  ;;  %v3793_v50 = vld [vmem:[%s5698_s3 + $0x220] ss:$16 sps:$4 sm:$0xff]   ;;  %v3801_v53 = vld [vmem:[%s5698_s3 + $0x244] ss:$16 sps:$4 sm:$0xff]   ;;  %v3804_v54 = vld [vmem:[%s5698_s3 + $0x24c] ss:$16 sps:$4 sm:$0xff]  }
 0x106   :  { %v4143_v57 = vpop.eup %4142  ;;  %v390_v58 = vmul.f32 0.6931472, %v4141_v52  ;;  %v342_v10 = vmax.f32 %v4619_v62, 0.0  ;;  %v3843_v62 = vld [vmem:[%s5698_s3 + $0x324] ss:$16 sps:$4 sm:$0xff]  }
 0x107   :  { %v4145_v61 = vpop.eup %4144  ;;  %v399_v63 = vmul.f32 0.6931472, %v4143_v57 }
 0x108   :  { %v396_v5 = vsel %vm4646_vm3, %v393_v59, %v390_v58  ;;  %v435_v8 = vmul.f32 0.6931472, %v4145_v61  ;;  %v4147_v11 = vpop.eup %4146  ;;  %v3799_v59 = vld [vmem:[%s5698_s3 + $0x240] ss:$16 sps:$4 sm:$0xff]   ;;  %v3802_v61 = vld [vmem:[%s5698_s3 + $0x248] ss:$16 sps:$4 sm:$0xff]  }
 0x109   :  { %v405_v14 = vsel %vm4653_vm4, %v402_v6, %v399_v63  ;;  %v444_v17 = vmul.f32 0.6931472, %v4147_v11  ;;  %v4661_v20 = vpop.eup %4148  ;;  %v478_v13 = vadd.f32 %v396_v5, %v338_v30  ;;  %v3807_v5 = vld [vmem:[%s5698_s3 + $0x264] ss:$16 sps:$4 sm:$0xff]   ;;  %v3810_v11 = vld [vmem:[%s5698_s3 + $0x26c] ss:$16 sps:$4 sm:$0xff]  }
 0x10a   :  { %v441_v16 = vsel %vm440_vm5, %v438_v9, %v435_v8  ;;  %v4664_v23 = vpop.eup %4150  ;;  %v406_v42 = vadd.f32 1.0, %v4661_v20  ;;  %v479_v26 = vadd.f32 %v405_v14, %v339_v46  ;;  %v409_v46 = vmul.f32 -0.5, %v4661_v20 }
 0x10b   :  { %v483_v15 = vadd.f32 %v441_v16, %v343_v12  ;;  %v450_v25 = vsel %vm449_vm6, %v447_v18, %v444_v17  ;;  %v424_v29 = vadd.f32 1.0, %v4664_v23  ;;  %v4668_v32 = vpop.eup %4152  ;;  %v427_v43 = vmul.f32 -0.5, %v4664_v23 }
 0x10c   :  { %v484_v28 = vadd.f32 %v450_v25, %v344_v21  ;;  %4160 = vlog2.f32 %v406_v42  ;;  %v4670_v19 = vpop.eup %4154  ;;  %v469_v35 = vadd.f32 1.0, %v4668_v32  ;;  %v472_v48 = vmul.f32 -0.5, %v4668_v32  ;;  %v3808_v21 = vld [vmem:[%s5698_s3 + $0x268] ss:$16 sps:$4 sm:$0xff]   ;;  %v3813_v42 = vld [vmem:[%s5698_s3 + $0x284] ss:$16 sps:$4 sm:$0xff]  }
 0x10d   :  { %v488_v27 = vpack.c.bf16 %v483_v15, %v478_v13  ;;  %4162 = vlog2.f32 %v424_v29  ;;  %v415_v36 = vadd.f32 1.0, %v4670_v19  ;;  %v4687_v44 = vpop.eup %4156  ;;  %v418_v49 = vmul.f32 -0.5, %v4670_v19  ;;  %v3805_v15 = vld [vmem:[%s5698_s3 + $0x260] ss:$16 sps:$4 sm:$0xff]   ;;  %v3838_v25 = vld [vmem:[%s5698_s3 + $0x308] ss:$16 sps:$4 sm:$0xff]  }
 0x10e   :  { %v489_v30 = vpack.c.bf16 %v484_v28, %v479_v26  ;;  %4164 = vlog2.f32 %v469_v35  ;;  %v451_v47 = vadd.f32 1.0, %v4687_v44  ;;  %v4692_v37 = vpop.eup %4158  ;;  %v428_v55 = vadd.f32 1.0, %v427_v43 }
 0x10f   :  { %4166 = vlog2.f32 %v415_v36  ;;  %v460_v52 = vadd.f32 1.0, %v4692_v37  ;;  %v410_v57 = vadd.f32 1.0, %v409_v46  ;;  %v454_v58 = vmul.f32 -0.5, %v4687_v44 }
 0x110   :  { %1464 = vmatprep.mubr.bf16.mxu1 %v489_v30  ;;  %1593 = vmatprep.mubr.bf16.mxu0 %v489_v30  ;;  %4168 = vlog2.f32 %v451_v47  ;;  %v430_v60 = vand.u32 2147483647, %v4664_v23  ;;  %v412_v39 = vand.u32 2147483647, %v4661_v20  ;;  %v473_v63 = vadd.f32 1.0, %v472_v48 }
 0x111   :  { %1465 = vmatmul.mubr.bf16.vlgmr.msra.gmra.mrb[8].mxu1 %v488_v27  ;;  %1594 = vmatmul.mubr.bf16.vlgmr.msra.gmra.mrb[4].mxu0 %v488_v27  ;;  %4170 = vlog2.f32 %v460_v52  ;;  %v419_v1 = vadd.f32 1.0, %v418_v49  ;;  %v463_v3 = vmul.f32 -0.5, %v4692_v37  ;;  %v475_v6 = vand.u32 2147483647, %v4668_v32  ;;  %v3858_v30 = vld [vmem:[%s5698_s3 + $0x36c] ss:$16 sps:$4 sm:$0xff]  }
 0x112   :  { %1476 = vmatpush1.bf16.msra.mxu1 %v3787_v45  ;;  %1605 = vmatpush1.bf16.msra.mxu0 %v3790_v34  ;;  %v421_v9 = vand.u32 2147483647, %v4670_v19  ;;  %v429_v12 = vmul.f32 %v4664_v23, %v428_v55  ;;  %v347_v14 = vmax.f32 %v4626_v7, 0.0  ;;  %v411_v18 = vmul.f32 %v4661_v20, %v410_v57  ;;  %v3861_v34 = vld [vmem:[%s5698_s3 + $0x384] ss:$16 sps:$4 sm:$0xff]  }
 0x113   :  { %1477 = vmatprep.subr.bf16.mxu1 %v3795_v38  ;;  %1606 = vmatprep.subr.bf16.mxu0 %v3798_v41  ;;  %v455_v13 = vadd.f32 1.0, %v454_v58  ;;  %vm4736_vm7 = vcmp.lt.f32.partialorder %v430_v60, 0.0004427343  ;;  %vm4740_vm8 = vcmp.lt.f32.partialorder %v412_v39, 0.0004427343  ;;  %v474_v23 = vmul.f32 %v4668_v32, %v473_v63 }
 0x114   :  { %v457_v7 = vand.u32 2147483647, %v4687_v44  ;;  %v340_v27 = vmax.f32 %v4623_v4, 0.0  ;;  %v420_v28 = vmul.f32 %v4670_v19, %v419_v1  ;;  %v464_v29 = vadd.f32 1.0, %v463_v3  ;;  %v3816_v32 = vld [vmem:[%s5698_s3 + $0x28c] ss:$16 sps:$4 sm:$0xff]  }
 0x115   :  { %vm4751_vm9 = vcmp.lt.f32.partialorder %v475_v6, 0.0004427343  ;;  %vm4758_vm10 = vcmp.lt.f32.partialorder %v421_v9, 0.0004427343  ;;  %v466_v4 = vand.u32 2147483647, %v4692_v37  ;;  %v456_v41 = vmul.f32 %v4687_v44, %v455_v13 }
 0x116   :  { %1478 = vmatpush1.bf16.msra.mxu1 %v3793_v50  ;;  %1607 = vmatpush1.bf16.msra.mxu0 %v3796_v51  ;;  %v4161_v8 = vpop.eup %4160  ;;  %v341_v47 = vmax.f32 %v4633_v22, 0.0  ;;  %v345_v48 = vmax.f32 %v4636_v24, 0.0  ;;  %vm4770_vm11 = vcmp.lt.f32.partialorder %v457_v7, 0.0004427343  ;;  %v3811_v51 = vld [vmem:[%s5698_s3 + $0x280] ss:$16 sps:$4 sm:$0xff]  }
 0x117   :  { %1479 = vmatprep.subr.bf16.mxu1 %v3801_v53  ;;  %1608 = vmatprep.subr.bf16.mxu0 %v3804_v54  ;;  %v4163_v16 = vpop.eup %4162  ;;  %v408_v17 = vmul.f32 0.6931472, %v4161_v8  ;;  %v465_v53 = vmul.f32 %v4692_v37, %v464_v29  ;;  %v3814_v24 = vld [vmem:[%s5698_s3 + $0x288] ss:$16 sps:$4 sm:$0xff]   ;;  %v3819_v54 = vld [vmem:[%s5698_s3 + $0x2a4] ss:$16 sps:$4 sm:$0xff]  }
 0x118   :  { %v426_v20 = vmul.f32 0.6931472, %v4163_v16  ;;  %v4165_v26 = vpop.eup %4164  ;;  %v346_v58 = vmax.f32 %v4641_v40, 0.0  ;;  %vm467_vm12 = vcmp.lt.f32.partialorder %v466_v4, 0.0004427343 }
 0x119   :  { %v4167_v45 = vpop.eup %4166  ;;  %v471_v35 = vmul.f32 0.6931472, %v4165_v26  ;;  %v414_v36 = vsel %vm4740_vm8, %v411_v18, %v408_v17  ;;  %v3822_v37 = vld [vmem:[%s5698_s3 + $0x2ac] ss:$16 sps:$4 sm:$0xff]   ;;  %v3817_v40 = vld [vmem:[%s5698_s3 + $0x2a0] ss:$16 sps:$4 sm:$0xff]  }
 0x11a   :  { %1480 = vmatpush1.bf16.msra.mxu1 %v3799_v59  ;;  %1609 = vmatpush1.bf16.msra.mxu0 %v3802_v61  ;;  %v432_v19 = vsel %vm4736_vm7, %v429_v12, %v426_v20  ;;  %v417_v38 = vmul.f32 0.6931472, %v4167_v45  ;;  %v4169_v46 = vpop.eup %4168  ;;  %v480_v57 = vadd.f32 %v414_v36, %v340_v27  ;;  %v3820_v3 = vld [vmem:[%s5698_s3 + $0x2a8] ss:$16 sps:$4 sm:$0xff]   ;;  %v3825_v8 = vld [vmem:[%s5698_s3 + $0x2c4] ss:$16 sps:$4 sm:$0xff]  }
 0x11b   :  { %1481 = vmatprep.subr.bf16.mxu1 %v3807_v5  ;;  %1610 = vmatprep.subr.bf16.mxu0 %v3810_v11  ;;  %v482_v43 = vadd.f32 %v432_v19, %v342_v10  ;;  %v477_v50 = vsel %vm4751_vm9, %v474_v23, %v471_v35  ;;  %v453_v52 = vmul.f32 0.6931472, %v4169_v46  ;;  %v4171_v55 = vpop.eup %4170  ;;  %v3828_v9 = vld [vmem:[%s5698_s3 + $0x2cc] ss:$16 sps:$4 sm:$0xff]   ;;  %v3823_v10 = vld [vmem:[%s5698_s3 + $0x2c0] ss:$16 sps:$4 sm:$0xff]  }
 0x11c   :  { %v423_v44 = vsel %vm4758_vm10, %v420_v28, %v417_v38  ;;  %v487_v22 = vadd.f32 %v477_v50, %v347_v14  ;;  %v462_v60 = vmul.f32 0.6931472, %v4171_v55  ;;  %v3826_v12 = vld [vmem:[%s5698_s3 + $0x2c8] ss:$16 sps:$4 sm:$0xff]   ;;  %v3831_v14 = vld [vmem:[%s5698_s3 + $0x2e4] ss:$16 sps:$4 sm:$0xff]  }
 0x11d   :  { %v459_v59 = vsel %vm4770_vm11, %v456_v41, %v453_v52  ;;  %v481_v61 = vadd.f32 %v423_v44, %v341_v47  ;;  %v3834_v16 = vld [vmem:[%s5698_s3 + $0x2ec] ss:$16 sps:$4 sm:$0xff]   ;;  %v3829_v17 = vld [vmem:[%s5698_s3 + $0x2e0] ss:$16 sps:$4 sm:$0xff]   ;;  %v3832_v18 = vld [vmem:[%s5698_s3 + $0x2e8] ss:$16 sps:$4 sm:$0xff]  }
 0x11e   :  { %1482 = vmatpush1.bf16.msra.mxu1 %v3805_v15  ;;  %1611 = vmatpush1.bf16.msra.mxu0 %v3808_v21  ;;  %v4794_v39 = vpack.c.bf16 %v487_v22, %v482_v43  ;;  %v485_v63 = vadd.f32 %v459_v59, %v345_v48  ;;  %v468_v1 = vsel %vm467_vm12, %v465_v53, %v462_v60  ;;  %v3837_v13 = vld [vmem:[%s5698_s3 + $0x304] ss:$16 sps:$4 sm:$0xff]   ;;  %v3840_v15 = vld [vmem:[%s5698_s3 + $0x30c] ss:$16 sps:$4 sm:$0xff]   ;;  %v3835_v21 = vld [vmem:[%s5698_s3 + $0x300] ss:$16 sps:$4 sm:$0xff]  }
 0x11f   :  { %1483 = vmatprep.subr.bf16.mxu1 %v3813_v42  ;;  %1612 = vmatprep.subr.bf16.mxu0 %v3816_v32  ;;  %v486_v6 = vadd.f32 %v468_v1, %v346_v58  ;;  %v3846_v7 = vld [vmem:[%s5698_s3 + $0x32c] ss:$16 sps:$4 sm:$0xff]   ;;  %v3841_v20 = vld [vmem:[%s5698_s3 + $0x320] ss:$16 sps:$4 sm:$0xff]   ;;  %v3844_v23 = vld [vmem:[%s5698_s3 + $0x328] ss:$16 sps:$4 sm:$0xff]  }
 0x120   :  { %v4802_v5 = vpack.c.bf16 %v485_v63, %v480_v57  ;;  %v3849_v42 = vld [vmem:[%s5698_s3 + $0x344] ss:$16 sps:$4 sm:$0xff]   ;;  %v3852_v26 = vld [vmem:[%s5698_s3 + $0x34c] ss:$16 sps:$4 sm:$0xff]   ;;  %v3847_v27 = vld [vmem:[%s5698_s3 + $0x340] ss:$16 sps:$4 sm:$0xff]  }
 0x121   :  { %v491_v11 = vpack.c.bf16 %v486_v6, %v481_v61  ;;  %v3850_v28 = vld [vmem:[%s5698_s3 + $0x348] ss:$16 sps:$4 sm:$0xff]   ;;  %v3855_v29 = vld [vmem:[%s5698_s3 + $0x364] ss:$16 sps:$4 sm:$0xff]   ;;  %v3853_v32 = vld [vmem:[%s5698_s3 + $0x360] ss:$16 sps:$4 sm:$0xff]  }
 0x122   :  { %1484 = vmatpush1.bf16.msra.mxu1 %v3811_v51  ;;  %1613 = vmatpush1.bf16.msra.mxu0 %v3814_v24  ;;  %v3856_v45 = vld [vmem:[%s5698_s3 + $0x368] ss:$16 sps:$4 sm:$0xff]   ;;  %v3864_v4 = vld [vmem:[%s5698_s3 + $0x38c] ss:$16 sps:$4 sm:$0xff]   ;;  %v3859_v19 = vld [vmem:[%s5698_s3 + $0x380] ss:$16 sps:$4 sm:$0xff]  }
 0x123   :  { %1485 = vmatprep.subr.bf16.mxu1 %v3819_v54  ;;  %1614 = vmatprep.subr.bf16.mxu0 %v3822_v37  ;;  %v3862_v35 = vld [vmem:[%s5698_s3 + $0x388] ss:$16 sps:$4 sm:$0xff]   ;;  %v3867_v36 = vld [vmem:[%s5698_s3 + $0x3a4] ss:$16 sps:$4 sm:$0xff]   ;;  %v3870_v38 = vld [vmem:[%s5698_s3 + $0x3ac] ss:$16 sps:$4 sm:$0xff]  }
 0x124   :  { %1507 = vmatprep.mubr.bf16.mxu1 %v491_v11  ;;  %1636 = vmatprep.mubr.bf16.mxu0 %v491_v11  ;;  %v3865_v41 = vld [vmem:[%s5698_s3 + $0x3a0] ss:$16 sps:$4 sm:$0xff]   ;;  %v3868_v43 = vld [vmem:[%s5698_s3 + $0x3a8] ss:$16 sps:$4 sm:$0xff]   ;;  %v3873_v46 = vld [vmem:[%s5698_s3 + $0x3c4] ss:$16 sps:$4 sm:$0xff]  }
 0x125   :  { %v3876_v47 = vld [vmem:[%s5698_s3 + $0x3cc] ss:$16 sps:$4 sm:$0xff]   ;;  %v3871_v48 = vld [vmem:[%s5698_s3 + $0x3c0] ss:$16 sps:$4 sm:$0xff]   ;;  %v3874_v49 = vld [vmem:[%s5698_s3 + $0x3c8] ss:$16 sps:$4 sm:$0xff]  }
 0x126   :  { %1486 = vmatpush1.bf16.msra.mxu1 %v3817_v40  ;;  %1615 = vmatpush1.bf16.msra.mxu0 %v3820_v3  ;;  %v3879_v50 = vld [vmem:[%s5698_s3 + $0x3e4] ss:$16 sps:$4 sm:$0xff]   ;;  %v3882_v51 = vld [vmem:[%s5698_s3 + $0x3ec] ss:$16 sps:$4 sm:$0xff]   ;;  %v3877_v44 = vld [vmem:[%s5698_s3 + $0x3e0] ss:$16 sps:$4 sm:$0xff]  }
 0x127   :  { %1487 = vmatprep.subr.bf16.mxu1 %v3825_v8  ;;  %1616 = vmatprep.subr.bf16.mxu0 %v3828_v9  ;;  %v3880_v52 = vld [vmem:[%s5698_s3 + $0x3e8] ss:$16 sps:$4 sm:$0xff]   ;;  %v3885_v53 = vld [vmem:[%s5698_s3 + $0x404] ss:$16 sps:$4 sm:$0xff]   ;;  %v3888_v22 = vld [vmem:[%s5698_s3 + $0x40c] ss:$16 sps:$4 sm:$0xff]  }
 0x128   :  { %v3883_v24 = vld [vmem:[%s5698_s3 + $0x400] ss:$16 sps:$4 sm:$0xff]   ;;  %v3886_v54 = vld [vmem:[%s5698_s3 + $0x408] ss:$16 sps:$4 sm:$0xff]   ;;  %v3891_v55 = vld [vmem:[%s5698_s3 + $0x424] ss:$16 sps:$4 sm:$0xff]  }
 0x129   :  { %v3894_v57 = vld [vmem:[%s5698_s3 + $0x42c] ss:$16 sps:$4 sm:$0xff]   ;;  %v3889_v58 = vld [vmem:[%s5698_s3 + $0x420] ss:$16 sps:$4 sm:$0xff]   ;;  %v3892_v37 = vld [vmem:[%s5698_s3 + $0x428] ss:$16 sps:$4 sm:$0xff]  }
 0x12a   :  { %1488 = vmatpush1.bf16.msra.mxu1 %v3823_v10  ;;  %1617 = vmatpush1.bf16.msra.mxu0 %v3826_v12  ;;  %v3897_v59 = vld [vmem:[%s5698_s3 + $0x444] ss:$16 sps:$4 sm:$0xff]   ;;  %v3900_v60 = vld [vmem:[%s5698_s3 + $0x44c] ss:$16 sps:$4 sm:$0xff]   ;;  %v3895_v61 = vld [vmem:[%s5698_s3 + $0x440] ss:$16 sps:$4 sm:$0xff]  }
 0x12b   :  { %1489 = vmatprep.subr.bf16.mxu1 %v3831_v14  ;;  %1618 = vmatprep.subr.bf16.mxu0 %v3834_v16  ;;  %v3898_v63 = vld [vmem:[%s5698_s3 + $0x448] ss:$16 sps:$4 sm:$0xff]   ;;  %v3903_v1 = vld [vmem:[%s5698_s3 + $0x464] ss:$16 sps:$4 sm:$0xff]   ;;  %v3906_v40 = vld [vmem:[%s5698_s3 + $0x46c] ss:$16 sps:$4 sm:$0xff]  }
 0x12c   :  { %v3901_v3 = vld [vmem:[%s5698_s3 + $0x460] ss:$16 sps:$4 sm:$0xff]   ;;  %v3909_v6 = vld [vmem:[%s5698_s3 + $0x484] ss:$16 sps:$4 sm:$0xff]   ;;  %v3912_v8 = vld [vmem:[%s5698_s3 + $0x48c] ss:$16 sps:$4 sm:$0xff]  }
 0x12d   :  { %v641_v9 = vld [vmem:[%s5698_s3 + $0x4a0] sm:$0xff]  ;;  %v642_v11 = vld [vmem:[%s5698_s3 + $0x4a8] sm:$0xff]  ;;  %vm2592_vm7 = vcmask 949248   ;;  %vm2596_vm8 = vcmask 1041408  }
 0x12e   :  { %1490 = vmatpush1.bf16.msra.mxu1 %v3829_v17  ;;  %1619 = vmatpush1.bf16.msra.mxu0 %v3832_v18  ;;  %v3907_v10 = vld [vmem:[%s5698_s3 + $0x480] ss:$16 sps:$4 sm:$0xff]   ;;  %v3910_v12 = vld [vmem:[%s5698_s3 + $0x488] ss:$16 sps:$4 sm:$0xff]   ;;  %v3411_v14 = vcombine.high %v641_v9, %v641_v9  ;;  %v3413_v16 = vcombine.high %v642_v11, %v642_v11  ;;  %v3410_v17 = vcombine.low %v641_v9, %v641_v9  ;;  %v3994_v9 = vld [vmem:[%s5700_s5 + $0x18c] ss:$16 sps:$4 sm:$0xff]  }
 0x12f   :  { %1491 = vmatprep.subr.bf16.mxu1 %v3837_v13  ;;  %1620 = vmatprep.subr.bf16.mxu0 %v3840_v15  ;;  %v3412_v18 = vcombine.low %v642_v11, %v642_v11  ;;  %v3989_v11 = vld [vmem:[%s5700_s5 + $0x180] ss:$16 sps:$4 sm:$0xff]  }
 0x130   :  { %v1421_v13 = vsel %vm1419_vm13, %v3410_v17, 0  ;;  %v3998_v17 = vld [vmem:[%s5700_s5 + $0x1a8] ss:$16 sps:$4 sm:$0xff]  }
 0x131   :  { %v1427_v15 = vsel %vm1419_vm13, %v3412_v18, 0  ;;  %v4003_v18 = vld [vmem:[%s5700_s5 + $0x1c4] ss:$16 sps:$4 sm:$0xff]  }
 0x132   :  { %1492 = vmatpush1.bf16.msra.mxu1 %v3835_v21  ;;  %1621 = vmatpush1.bf16.msra.mxu0 %v3838_v25  ;;  %v3919_v21 = vld [vmem:[%s5700_s5 + $0x4] ss:$16 sps:$4 sm:$0xff]   ;;  %v3922_v25 = vld [vmem:[%s5700_s5 + $0xc] ss:$16 sps:$4 sm:$0xff]  }
 0x133   :  { %1493 = vmatprep.subr.bf16.mxu1 %v3843_v62  ;;  %1622 = vmatprep.subr.bf16.mxu0 %v3846_v7  ;;  %v3917_v62 = vld [vmem:[%s5700_s5] ss:$16 sps:$4 sm:$0xff]   ;;  %v3920_v7 = vld [vmem:[%s5700_s5 + $0x8] ss:$16 sps:$4 sm:$0xff]  }
 0x136   :  { %1494 = vmatpush1.bf16.msra.mxu1 %v3841_v20  ;;  %1623 = vmatpush1.bf16.msra.mxu0 %v3844_v23  ;;  %v3925_v20 = vld [vmem:[%s5700_s5 + $0x24] ss:$16 sps:$4 sm:$0xff]   ;;  %v3928_v23 = vld [vmem:[%s5700_s5 + $0x2c] ss:$16 sps:$4 sm:$0xff]  }
 0x137   :  { %1495 = vmatprep.subr.bf16.mxu1 %v3849_v42  ;;  %1624 = vmatprep.subr.bf16.mxu0 %v3852_v26  ;;  %v3923_v42 = vld [vmem:[%s5700_s5 + $0x20] ss:$16 sps:$4 sm:$0xff]   ;;  %v3926_v26 = vld [vmem:[%s5700_s5 + $0x28] ss:$16 sps:$4 sm:$0xff]  }
 0x13a   :  { %1496 = vmatpush1.bf16.msra.mxu1 %v3847_v27  ;;  %1625 = vmatpush1.bf16.msra.mxu0 %v3850_v28  ;;  %v3931_v27 = vld [vmem:[%s5700_s5 + $0x44] ss:$16 sps:$4 sm:$0xff]   ;;  %v3929_v28 = vld [vmem:[%s5700_s5 + $0x40] ss:$16 sps:$4 sm:$0xff]  }
 0x13b   :  { %1497 = vmatprep.subr.bf16.mxu1 %v3855_v29  ;;  %1626 = vmatprep.subr.bf16.mxu0 %v3858_v30  ;;  %v3932_v29 = vld [vmem:[%s5700_s5 + $0x48] ss:$16 sps:$4 sm:$0xff]   ;;  %v3937_v30 = vld [vmem:[%s5700_s5 + $0x64] ss:$16 sps:$4 sm:$0xff]  }
 0x13e   :  { %1498 = vmatpush1.bf16.msra.mxu1 %v3853_v32  ;;  %1627 = vmatpush1.bf16.msra.mxu0 %v3856_v45  ;;  %v3940_v32 = vld [vmem:[%s5700_s5 + $0x6c] ss:$16 sps:$4 sm:$0xff]   ;;  %v3935_v45 = vld [vmem:[%s5700_s5 + $0x60] ss:$16 sps:$4 sm:$0xff]  }
 0x13f   :  { %1499 = vmatprep.subr.bf16.mxu1 %v3861_v34  ;;  %1628 = vmatprep.subr.bf16.mxu0 %v3864_v4  ;;  %v3938_v34 = vld [vmem:[%s5700_s5 + $0x68] ss:$16 sps:$4 sm:$0xff]   ;;  %v3943_v4 = vld [vmem:[%s5700_s5 + $0x84] ss:$16 sps:$4 sm:$0xff]  }
 0x142   :  { %1500 = vmatpush1.bf16.msra.mxu1 %v3859_v19  ;;  %1629 = vmatpush1.bf16.msra.mxu0 %v3862_v35  ;;  %v3946_v19 = vld [vmem:[%s5700_s5 + $0x8c] ss:$16 sps:$4 sm:$0xff]   ;;  %v3941_v35 = vld [vmem:[%s5700_s5 + $0x80] ss:$16 sps:$4 sm:$0xff]  }
 0x143   :  { %1501 = vmatprep.subr.bf16.mxu1 %v3867_v36  ;;  %1630 = vmatprep.subr.bf16.mxu0 %v3870_v38  ;;  %v3944_v36 = vld [vmem:[%s5700_s5 + $0x88] ss:$16 sps:$4 sm:$0xff]   ;;  %v3949_v38 = vld [vmem:[%s5700_s5 + $0xa4] ss:$16 sps:$4 sm:$0xff]  }
 0x146   :  { %1502 = vmatpush1.bf16.msra.mxu1 %v3865_v41  ;;  %1631 = vmatpush1.bf16.msra.mxu0 %v3868_v43  ;;  %v3952_v41 = vld [vmem:[%s5700_s5 + $0xac] ss:$16 sps:$4 sm:$0xff]   ;;  %v3947_v43 = vld [vmem:[%s5700_s5 + $0xa0] ss:$16 sps:$4 sm:$0xff]  }
 0x147   :  { %1503 = vmatprep.subr.bf16.mxu1 %v3873_v46  ;;  %1632 = vmatprep.subr.bf16.mxu0 %v3876_v47  ;;  %v3950_v46 = vld [vmem:[%s5700_s5 + $0xa8] ss:$16 sps:$4 sm:$0xff]   ;;  %v3955_v47 = vld [vmem:[%s5700_s5 + $0xc4] ss:$16 sps:$4 sm:$0xff]  }
 0x14a   :  { %1504 = vmatpush1.bf16.msra.mxu1 %v3871_v48  ;;  %1633 = vmatpush1.bf16.msra.mxu0 %v3874_v49  ;;  %v3958_v48 = vld [vmem:[%s5700_s5 + $0xcc] ss:$16 sps:$4 sm:$0xff]   ;;  %v3953_v49 = vld [vmem:[%s5700_s5 + $0xc0] ss:$16 sps:$4 sm:$0xff]  }
 0x14b   :  { %1505 = vmatprep.subr.bf16.mxu1 %v3879_v50  ;;  %1634 = vmatprep.subr.bf16.mxu0 %v3882_v51  ;;  %v3956_v50 = vld [vmem:[%s5700_s5 + $0xc8] ss:$16 sps:$4 sm:$0xff]   ;;  %v3961_v51 = vld [vmem:[%s5700_s5 + $0xe4] ss:$16 sps:$4 sm:$0xff]  }
 0x14e   :  { %1506 = vmatpush1.bf16.msra.mxu1 %v3877_v44  ;;  %1635 = vmatpush1.bf16.msra.mxu0 %v3880_v52  ;;  %v3964_v44 = vld [vmem:[%s5700_s5 + $0xec] ss:$16 sps:$4 sm:$0xff]   ;;  %v3959_v52 = vld [vmem:[%s5700_s5 + $0xe0] ss:$16 sps:$4 sm:$0xff]  }
 0x14f   :  { %1518 = vmatprep.subr.bf16.mxu1 %v3885_v53  ;;  %1647 = vmatprep.subr.bf16.mxu0 %v3888_v22  ;;  %v3962_v53 = vld [vmem:[%s5700_s5 + $0xe8] ss:$16 sps:$4 sm:$0xff]   ;;  %v3967_v22 = vld [vmem:[%s5700_s5 + $0x104] ss:$16 sps:$4 sm:$0xff]  }
 0x151   :  { %1508 = vmatmul.mubr.bf16.vlgmr.msra.gmra.mrb[8].mxu1 %v4802_v5  ;;  %1637 = vmatmul.mubr.bf16.vlgmr.msra.gmra.mrb[4].mxu0 %v4802_v5  ;;  %v3904_v5 = vld [vmem:[%s5698_s3 + $0x468] ss:$16 sps:$4 sm:$0xff]  }
 0x152   :  { %1519 = vmatpush1.bf16.msra.mxu1 %v3883_v24  ;;  %1648 = vmatpush1.bf16.msra.mxu0 %v3886_v54  ;;  %v3970_v24 = vld [vmem:[%s5700_s5 + $0x10c] ss:$16 sps:$4 sm:$0xff]   ;;  %v3965_v54 = vld [vmem:[%s5700_s5 + $0x100] ss:$16 sps:$4 sm:$0xff]  }
 0x153   :  { %1520 = vmatprep.subr.bf16.mxu1 %v3891_v55  ;;  %1649 = vmatprep.subr.bf16.mxu0 %v3894_v57  ;;  %v3968_v55 = vld [vmem:[%s5700_s5 + $0x108] ss:$16 sps:$4 sm:$0xff]   ;;  %v3973_v57 = vld [vmem:[%s5700_s5 + $0x124] ss:$16 sps:$4 sm:$0xff]  }
 0x154   :  { %1550 = vmatprep.mubr.bf16.mxu1 %v4268_v2  ;;  %1679 = vmatprep.mubr.bf16.mxu0 %v4268_v2 }
 0x156   :  { %1521 = vmatpush1.bf16.msra.mxu1 %v3889_v58  ;;  %1650 = vmatpush1.bf16.msra.mxu0 %v3892_v37  ;;  %v3976_v58 = vld [vmem:[%s5700_s5 + $0x12c] ss:$16 sps:$4 sm:$0xff]   ;;  %v3971_v37 = vld [vmem:[%s5700_s5 + $0x120] ss:$16 sps:$4 sm:$0xff]  }
 0x157   :  { %1522 = vmatprep.subr.bf16.mxu1 %v3897_v59  ;;  %1651 = vmatprep.subr.bf16.mxu0 %v3900_v60  ;;  %v3974_v59 = vld [vmem:[%s5700_s5 + $0x128] ss:$16 sps:$4 sm:$0xff]   ;;  %v3979_v60 = vld [vmem:[%s5700_s5 + $0x144] ss:$16 sps:$4 sm:$0xff]  }
 0x15a   :  { %1523 = vmatpush1.bf16.msra.mxu1 %v3895_v61  ;;  %1652 = vmatpush1.bf16.msra.mxu0 %v3898_v63  ;;  %v3982_v61 = vld [vmem:[%s5700_s5 + $0x14c] ss:$16 sps:$4 sm:$0xff]   ;;  %v3977_v63 = vld [vmem:[%s5700_s5 + $0x140] ss:$16 sps:$4 sm:$0xff]  }
 0x15b   :  { %1524 = vmatprep.subr.bf16.mxu1 %v3903_v1  ;;  %1653 = vmatprep.subr.bf16.mxu0 %v3906_v40  ;;  %v3980_v1 = vld [vmem:[%s5700_s5 + $0x148] ss:$16 sps:$4 sm:$0xff]   ;;  %v3985_v40 = vld [vmem:[%s5700_s5 + $0x164] ss:$16 sps:$4 sm:$0xff]  }
 0x15e   :  { %1525 = vmatpush1.bf16.msra.mxu1 %v3901_v3  ;;  %1654 = vmatpush1.bf16.msra.mxu0 %v3904_v5  ;;  %v3988_v3 = vld [vmem:[%s5700_s5 + $0x16c] ss:$16 sps:$4 sm:$0xff]   ;;  %v3983_v5 = vld [vmem:[%s5700_s5 + $0x160] ss:$16 sps:$4 sm:$0xff]  }
 0x15f   :  { %1526 = vmatprep.subr.bf16.mxu1 %v3909_v6  ;;  %1655 = vmatprep.subr.bf16.mxu0 %v3912_v8  ;;  %v3986_v6 = vld [vmem:[%s5700_s5 + $0x168] ss:$16 sps:$4 sm:$0xff]   ;;  %v3991_v8 = vld [vmem:[%s5700_s5 + $0x184] ss:$16 sps:$4 sm:$0xff]  }
 0x162   :  { %1527 = vmatpush1.bf16.msra.mxu1 %v3907_v10  ;;  %1656 = vmatpush1.bf16.msra.mxu0 %v3910_v12  ;;  %v3992_v10 = vld [vmem:[%s5700_s5 + $0x188] ss:$16 sps:$4 sm:$0xff]   ;;  %v3997_v12 = vld [vmem:[%s5700_s5 + $0x1a4] ss:$16 sps:$4 sm:$0xff]  }
 0x163   :  { %3414 = vmatprep.subr.msk.bf16.mxu1 %vm1419_vm13, %v3411_v14  ;;  %3416 = vmatprep.subr.msk.bf16.mxu0 %vm1419_vm13, %v3413_v16  ;;  %v4000_v14 = vld [vmem:[%s5700_s5 + $0x1ac] ss:$16 sps:$4 sm:$0xff]   ;;  %v3995_v16 = vld [vmem:[%s5700_s5 + $0x1a0] ss:$16 sps:$4 sm:$0xff]  }
 0x166   :  { %1529 = vmatpush1.bf16.msra.mxu1 %v1421_v13  ;;  %1658 = vmatpush1.bf16.msra.mxu0 %v1427_v15  ;;  %v4006_v13 = vld [vmem:[%s5700_s5 + $0x1cc] ss:$16 sps:$4 sm:$0xff]   ;;  %v4001_v15 = vld [vmem:[%s5700_s5 + $0x1c0] ss:$16 sps:$4 sm:$0xff]  }
 0x167   :  { %2609 = vmatprep.subr.bf16.mxu1 %v3919_v21  ;;  %2695 = vmatprep.subr.bf16.mxu0 %v3922_v25  ;;  %v4004_v21 = vld [vmem:[%s5700_s5 + $0x1c8] ss:$16 sps:$4 sm:$0xff]   ;;  %v4009_v25 = vld [vmem:[%s5700_s5 + $0x1e4] ss:$16 sps:$4 sm:$0xff]  }
 0x169   :  { %3415 = vmatmul.mubr.msk.bf16.vlgmr.msra.gmra.mrb[8].mxu1 %vm1415_vm14, %v4794_v39  ;;  %3417 = vmatmul.mubr.msk.bf16.vlgmr.msra.gmra.mrb[4].mxu0 %vm1415_vm14, %v4794_v39  ;;  %v3934_v39 = vld [vmem:[%s5700_s5 + $0x4c] ss:$16 sps:$4 sm:$0xff]  }
 0x16a   :  { %2610 = vmatpush1.bf16.msra.mxu1 %v3917_v62  ;;  %2696 = vmatpush1.bf16.msra.mxu0 %v3920_v7  ;;  %v4012_v62 = vld [vmem:[%s5700_s5 + $0x1ec] ss:$16 sps:$4 sm:$0xff]   ;;  %v4007_v7 = vld [vmem:[%s5700_s5 + $0x1e0] ss:$16 sps:$4 sm:$0xff]  }
 0x16b   :  { %2611 = vmatprep.subr.bf16.mxu1 %v3925_v20  ;;  %2697 = vmatprep.subr.bf16.mxu0 %v3928_v23  ;;  %v4010_v20 = vld [vmem:[%s5700_s5 + $0x1e8] ss:$16 sps:$4 sm:$0xff]   ;;  %v4015_v23 = vld [vmem:[%s5700_s5 + $0x204] ss:$16 sps:$4 sm:$0xff]  }
 0x16e   :  { %2612 = vmatpush1.bf16.msra.mxu1 %v3923_v42  ;;  %2698 = vmatpush1.bf16.msra.mxu0 %v3926_v26  ;;  %v4018_v42 = vld [vmem:[%s5700_s5 + $0x20c] ss:$16 sps:$4 sm:$0xff]   ;;  %v643_v26 = vld [vmem:[%s5699_s4] sm:$0xf] }
 0x16f   :  { %2613 = vmatprep.subr.bf16.mxu1 %v3931_v27  ;;  %2699 = vmatprep.subr.bf16.mxu0 %v3934_v39  ;;  %v648_v27 = vrot.slane %v643_v26, %v4595_v31  ;;  %v656_v39 = vrot.slane %v643_v26, %v4616_v56 }
 0x172   :  { %2614 = vmatpush1.bf16.msra.mxu1 %v3929_v28  ;;  %2700 = vmatpush1.bf16.msra.mxu0 %v3932_v29  ;;  %v652_v28 = vrot.slane %v643_v26, %v4600_v33  ;;  %v660_v29 = vrot.slane %v643_v26, %v4621_v0 }
 0x173   :  { %2615 = vmatprep.subr.bf16.mxu1 %v3937_v30  ;;  %2701 = vmatprep.subr.bf16.mxu0 %v3940_v32 }
 0x176   :  { %2616 = vmatpush1.bf16.msra.mxu1 %v3935_v45  ;;  %2702 = vmatpush1.bf16.msra.mxu0 %v3938_v34 }
 0x177   :  { %2617 = vmatprep.subr.bf16.mxu1 %v3943_v4  ;;  %2703 = vmatprep.subr.bf16.mxu0 %v3946_v19 }
 0x17a   :  { %2618 = vmatpush1.bf16.msra.mxu1 %v3941_v35  ;;  %2704 = vmatpush1.bf16.msra.mxu0 %v3944_v36 }
 0x17b   :  { %2619 = vmatprep.subr.bf16.mxu1 %v3949_v38  ;;  %2705 = vmatprep.subr.bf16.mxu0 %v3952_v41 }
 0x17e   :  { %2620 = vmatpush1.bf16.msra.mxu1 %v3947_v43  ;;  %2706 = vmatpush1.bf16.msra.mxu0 %v3950_v46 }
 0x17f   :  { %2621 = vmatprep.subr.bf16.mxu1 %v3955_v47  ;;  %2707 = vmatprep.subr.bf16.mxu0 %v3958_v48 }
 0x182   :  { %2622 = vmatpush1.bf16.msra.mxu1 %v3953_v49  ;;  %2708 = vmatpush1.bf16.msra.mxu0 %v3956_v50 }
 0x183   :  { %2623 = vmatprep.subr.bf16.mxu1 %v3961_v51  ;;  %2709 = vmatprep.subr.bf16.mxu0 %v3964_v44 }
 0x186   :  { %2624 = vmatpush1.bf16.msra.mxu1 %v3959_v52  ;;  %2710 = vmatpush1.bf16.msra.mxu0 %v3962_v53 }
 0x187   :  { %2625 = vmatprep.subr.bf16.mxu1 %v3967_v22  ;;  %2711 = vmatprep.subr.bf16.mxu0 %v3970_v24 }
 0x18a   :  { %2626 = vmatpush1.bf16.msra.mxu1 %v3965_v54  ;;  %2712 = vmatpush1.bf16.msra.mxu0 %v3968_v55 }
 0x18b   :  { %2627 = vmatprep.subr.bf16.mxu1 %v3973_v57  ;;  %2713 = vmatprep.subr.bf16.mxu0 %v3976_v58 }
 0x18e   :  { %2628 = vmatpush1.bf16.msra.mxu1 %v3971_v37  ;;  %2714 = vmatpush1.bf16.msra.mxu0 %v3974_v59 }
 0x18f   :  { %2629 = vmatprep.subr.bf16.mxu1 %v3979_v60  ;;  %2715 = vmatprep.subr.bf16.mxu0 %v3982_v61 }
 0x192   :  { %2630 = vmatpush1.bf16.msra.mxu1 %v3977_v63  ;;  %2716 = vmatpush1.bf16.msra.mxu0 %v3980_v1 }
 0x193   :  { %2631 = vmatprep.subr.bf16.mxu1 %v3985_v40  ;;  %2717 = vmatprep.subr.bf16.mxu0 %v3988_v3 }
 0x196   :  { %2632 = vmatpush1.bf16.msra.mxu1 %v3983_v5  ;;  %2718 = vmatpush1.bf16.msra.mxu0 %v3986_v6 }
 0x197   :  { %2633 = vmatprep.subr.bf16.mxu1 %v3991_v8  ;;  %2719 = vmatprep.subr.bf16.mxu0 %v3994_v9 }
 0x19a   :  { %2634 = vmatpush1.bf16.msra.mxu1 %v3989_v11  ;;  %2720 = vmatpush1.bf16.msra.mxu0 %v3992_v10 }
 0x19b   :  { %2635 = vmatprep.subr.bf16.mxu1 %v3997_v12  ;;  %2721 = vmatprep.subr.bf16.mxu0 %v4000_v14 }
 0x19e   :  { %2636 = vmatpush1.bf16.msra.mxu1 %v3995_v16  ;;  %2722 = vmatpush1.bf16.msra.mxu0 %v3998_v17 }
 0x19f   :  { %2637 = vmatprep.subr.bf16.mxu1 %v4003_v18  ;;  %2723 = vmatprep.subr.bf16.mxu0 %v4006_v13 }
 0x1a2   :  { %2638 = vmatpush1.bf16.msra.mxu1 %v4001_v15  ;;  %2724 = vmatpush1.bf16.msra.mxu0 %v4004_v21 }
 0x1a3   :  { %2639 = vmatprep.subr.bf16.mxu1 %v4009_v25  ;;  %2725 = vmatprep.subr.bf16.mxu0 %v4012_v62 }
 0x1a6   :  { %2640 = vmatpush1.bf16.msra.mxu1 %v4007_v7  ;;  %2726 = vmatpush1.bf16.msra.mxu0 %v4010_v20 }
 0x1a7   :  { %2652 = vmatprep.subr.bf16.mxu1 %v4015_v23  ;;  %2738 = vmatprep.subr.bf16.mxu0 %v4018_v42 }
 0x23c   :  { %v1552_v30 = vpop.f32.mrb[8].mxu1  ;;  %v1681_v32 = vpop.f32.mrb[4].mxu0 }
 0x23d   :  { %v5201_v45 = vadd.f32 %v1552_v30, %v648_v27  ;;  %v5203_v34 = vadd.f32 %v1681_v32, %v656_v39  ;;  %v1554_v4 = vpop.f32.mrb[9].mxu1  ;;  %v1683_v19 = vpop.f32.mrb[5].mxu0 }
 0x23e   :  { %v5205_v35 = vadd.f32 %v1554_v4, %v652_v28  ;;  %v5207_v36 = vadd.f32 %v1683_v19, %v660_v29  ;;  %v1556_v38 = vpop.f32.mrb[10].mxu1  ;;  %v1685_v41 = vpop.f32.mrb[6].mxu0 }
 0x23f   :  { %v1698_v43 = vand.u32 2147483647, %v5201_v45  ;;  %v1700_v46 = vand.u32 2147483647, %v5203_v34  ;;  %v5213_v51 = vadd.f32 %v1556_v38, %v648_v27  ;;  %v5215_v44 = vadd.f32 %v1685_v41, %v656_v39  ;;  %v1558_v52 = vpop.f32.mrb[11].mxu1  ;;  %v1687_v53 = vpop.f32.mrb[7].mxu0 }
 0x240   :  { %v1699_v47 = vand.u32 2147483647, %v5205_v35  ;;  %v1701_v48 = vand.u32 2147483647, %v5207_v36  ;;  %v5217_v54 = vadd.f32 %v1558_v52, %v652_v28  ;;  %v5219_v55 = vadd.f32 %v1687_v53, %v660_v29 }
 0x241   :  { %v1706_v49 = vsub.f32 0.0, %v1698_v43  ;;  %v1708_v50 = vsub.f32 0.0, %v1700_v46  ;;  %v1702_v60 = vand.u32 2147483647, %v5213_v51  ;;  %v1704_v61 = vand.u32 2147483647, %v5215_v44 }
 0x242   :  { %v1707_v22 = vsub.f32 0.0, %v1699_v47  ;;  %v1709_v24 = vsub.f32 0.0, %v1701_v48  ;;  %v1703_v63 = vand.u32 2147483647, %v5217_v54  ;;  %v1705_v40 = vand.u32 2147483647, %v5219_v55 }
 0x243   :  { %v1714_v57 = vmul.f32 1.442695, %v1706_v49  ;;  %v1718_v58 = vmul.f32 1.442695, %v1708_v50  ;;  %v1710_v1 = vsub.f32 0.0, %v1702_v60  ;;  %v1712_v3 = vsub.f32 0.0, %v1704_v61 }
 0x244   :  { %v1716_v37 = vmul.f32 1.442695, %v1707_v22  ;;  %v1720_v59 = vmul.f32 1.442695, %v1709_v24  ;;  %v1711_v5 = vsub.f32 0.0, %v1703_v63  ;;  %v1713_v8 = vsub.f32 0.0, %v1705_v40 }
 0x245   :  { %4172 = vpow2.f32 %v1714_v57  ;;  %v1722_v6 = vmul.f32 1.442695, %v1710_v1  ;;  %v1726_v9 = vmul.f32 1.442695, %v1712_v3  ;;  %v1690_v20 = vmax.f32 %v5201_v45, 0.0 }
 0x246   :  { %4174 = vpow2.f32 %v1718_v58  ;;  %v1724_v11 = vmul.f32 1.442695, %v1711_v5  ;;  %v1728_v10 = vmul.f32 1.442695, %v1713_v8  ;;  %v1692_v26 = vmax.f32 %v5203_v34, 0.0 }
 0x247   :  { %4176 = vpow2.f32 %v1716_v37  ;;  %v1691_v27 = vmax.f32 %v5205_v35, 0.0  ;;  %v1693_v39 = vmax.f32 %v5207_v36, 0.0  ;;  %v1694_v19 = vmax.f32 %v5213_v51, 0.0  ;;  %v4016_v35 = vld [vmem:[%s5700_s5 + $0x208] ss:$16 sps:$4 sm:$0xff]  }
 0x248   :  { %4178 = vpow2.f32 %v1720_v59  ;;  %v1696_v38 = vmax.f32 %v5215_v44, 0.0  ;;  %v1695_v24 = vmax.f32 %v5217_v54, 0.0  ;;  %v1697_v34 = vmax.f32 %v5219_v55, 0.0  ;;  %v4013_v44 = vld [vmem:[%s5700_s5 + $0x200] ss:$16 sps:$4 sm:$0xff]  }
 0x249   :  { %4180 = vpow2.f32 %v1722_v6  ;;  %v4021_v55 = vld [vmem:[%s5700_s5 + $0x224] ss:$16 sps:$4 sm:$0xff]   ;;  %v4024_v36 = vld [vmem:[%s5700_s5 + $0x22c] ss:$16 sps:$4 sm:$0xff]   ;;  %v4025_v6 = vld [vmem:[%s5700_s5 + $0x240] ss:$16 sps:$4 sm:$0xff]  }
 0x24a   :  { %4182 = vpow2.f32 %v1726_v9 }
 0x24b   :  { %4184 = vpow2.f32 %v1724_v11 }
 0x24c   :  { %4186 = vpow2.f32 %v1728_v10 }
 0x24f   :  { %v4173_v12 = vpop.eup %4172 }
 0x250   :  { %v4175_v14 = vpop.eup %4174  ;;  %v1730_v16 = vadd.f32 1.0, %v4173_v12  ;;  %v1733_v42 = vmul.f32 -0.5, %v4173_v12  ;;  %v1736_v29 = vand.u32 2147483647, %v4173_v12 }
 0x251   :  { %v4177_v17 = vpop.eup %4176  ;;  %v1748_v18 = vadd.f32 1.0, %v4175_v14  ;;  %v1751_v30 = vmul.f32 -0.5, %v4175_v14  ;;  %v1754_v43 = vand.u32 2147483647, %v4175_v14 }
 0x252   :  { %v5225_v13 = vpop.eup %4178  ;;  %4188 = vlog2.f32 %v1730_v16  ;;  %v1739_v15 = vadd.f32 1.0, %v4177_v17  ;;  %v1742_v4 = vmul.f32 -0.5, %v4177_v17  ;;  %v1734_v48 = vadd.f32 1.0, %v1733_v42 }
 0x253   :  { %4190 = vlog2.f32 %v1748_v18  ;;  %v4181_v21 = vpop.eup %4180  ;;  %v1757_v25 = vadd.f32 1.0, %v5225_v13  ;;  %v1760_v46 = vmul.f32 -0.5, %v5225_v13  ;;  %v1745_v49 = vand.u32 2147483647, %v4177_v17 }
 0x254   :  { %v5228_v62 = vpop.eup %4182  ;;  %4192 = vlog2.f32 %v1739_v15  ;;  %v1766_v23 = vadd.f32 1.0, %v4181_v21  ;;  %v1769_v47 = vmul.f32 -0.5, %v4181_v21  ;;  %vm5244_vm15 = vcmp.lt.f32.partialorder %v1736_v29, 0.0004427343  ;;  %v4037_v15 = vld [vmem:[%s5700_s5 + $0x280] ss:$16 sps:$4 sm:$0xff]  }
 0x255   :  { %v5230_v7 = vpop.eup %4184  ;;  %4194 = vlog2.f32 %v1757_v25  ;;  %v1784_v32 = vadd.f32 1.0, %v5228_v62  ;;  %v1752_v51 = vadd.f32 1.0, %v1751_v30  ;;  %v1787_v22 = vmul.f32 -0.5, %v5228_v62 }
 0x256   :  { %v5236_v28 = vpop.eup %4186  ;;  %4196 = vlog2.f32 %v1766_v23  ;;  %v1775_v41 = vadd.f32 1.0, %v5230_v7  ;;  %v1743_v58 = vadd.f32 1.0, %v1742_v4  ;;  %v1763_v37 = vand.u32 2147483647, %v5225_v13 }
 0x257   :  { %4198 = vlog2.f32 %v1784_v32  ;;  %v1793_v50 = vadd.f32 1.0, %v5236_v28  ;;  %v1778_v59 = vmul.f32 -0.5, %v5230_v7  ;;  %vm5252_vm0 = vcmp.lt.f32.partialorder %v1754_v43, 0.0004427343  ;;  %v4054_v32 = vld [vmem:[%s5700_s5 + $0x2cc] ss:$16 sps:$4 sm:$0xff]  }
 0x258   :  { %4200 = vlog2.f32 %v1775_v41  ;;  %v1761_v61 = vadd.f32 1.0, %v1760_v46  ;;  %v1770_v63 = vadd.f32 1.0, %v1769_v47  ;;  %v1772_v1 = vand.u32 2147483647, %v4181_v21 }
 0x259   :  { %4202 = vlog2.f32 %v1793_v50  ;;  %v1735_v5 = vmul.f32 %v4173_v12, %v1734_v48  ;;  %vm5256_vm1 = vcmp.lt.f32.partialorder %v1745_v49, 0.0004427343  ;;  %v1796_v54 = vmul.f32 -0.5, %v5236_v28  ;;  %v4066_v48 = vld [vmem:[%s5700_s5 + $0x30c] ss:$16 sps:$4 sm:$0xff]  }
 0x25a   :  { %v1753_v11 = vmul.f32 %v4175_v14, %v1752_v51  ;;  %v1788_v10 = vadd.f32 1.0, %v1787_v22  ;;  %v1790_v16 = vand.u32 2147483647, %v5228_v62  ;;  %v1744_v18 = vmul.f32 %v4177_v17, %v1743_v58 }
 0x25b   :  { %vm5262_vm2 = vcmp.lt.f32.partialorder %v1763_v37, 0.0004427343  ;;  %v1779_v25 = vadd.f32 1.0, %v1778_v59  ;;  %v1781_v12 = vand.u32 2147483647, %v5230_v7  ;;  %v1762_v29 = vmul.f32 %v5225_v13, %v1761_v61 }
 0x25c   :  { %v4189_v52 = vpop.eup %4188  ;;  %v1771_v30 = vmul.f32 %v4181_v21, %v1770_v63  ;;  %vm5268_vm3 = vcmp.lt.f32.partialorder %v1772_v1, 0.0004427343  ;;  %v1797_v41 = vadd.f32 1.0, %v1796_v54  ;;  %v1789_v47 = vmul.f32 %v5228_v62, %v1788_v10  ;;  %v4028_v54 = vld [vmem:[%s5700_s5 + $0x248] ss:$16 sps:$4 sm:$0xff]  }
 0x25d   :  { %v4191_v57 = vpop.eup %4190  ;;  %v1732_v3 = vmul.f32 0.6931472, %v4189_v52  ;;  %vm5277_vm4 = vcmp.lt.f32.partialorder %v1790_v16, 0.0004427343  ;;  %v1799_v13 = vand.u32 2147483647, %v5236_v28  ;;  %v1780_v52 = vmul.f32 %v5230_v7, %v1779_v25 }
 0x25e   :  { %v4193_v40 = vpop.eup %4192  ;;  %v1750_v9 = vmul.f32 0.6931472, %v4191_v57  ;;  %vm1782_vm5 = vcmp.lt.f32.partialorder %v1781_v12, 0.0004427343  ;;  %v1798_v7 = vmul.f32 %v5236_v28, %v1797_v41  ;;  %v4034_v10 = vld [vmem:[%s5700_s5 + $0x268] ss:$16 sps:$4 sm:$0xff]  }
 0x25f   :  { %v4195_v8 = vpop.eup %4194  ;;  %v1741_v42 = vmul.f32 0.6931472, %v4193_v40  ;;  %v1738_v14 = vsel %vm5244_vm15, %v1735_v5, %v1732_v3  ;;  %vm1800_vm6 = vcmp.lt.f32.partialorder %v1799_v13, 0.0004427343  ;;  %v4030_v5 = vld [vmem:[%s5700_s5 + $0x24c] ss:$16 sps:$4 sm:$0xff]  }
 0x260   :  { %v4197_v23 = vpop.eup %4196  ;;  %v1759_v17 = vmul.f32 0.6931472, %v4195_v8  ;;  %v1756_v46 = vsel %vm5252_vm0, %v1753_v11, %v1750_v9  ;;  %v1802_v53 = vadd.f32 %v1738_v14, %v1690_v20  ;;  %v4033_v8 = vld [vmem:[%s5700_s5 + $0x264] ss:$16 sps:$4 sm:$0xff]   ;;  %v4036_v9 = vld [vmem:[%s5700_s5 + $0x26c] ss:$16 sps:$4 sm:$0xff]  }
 0x261   :  { %v1768_v4 = vmul.f32 0.6931472, %v4197_v23  ;;  %v4199_v43 = vpop.eup %4198  ;;  %v1747_v62 = vsel %vm5256_vm1, %v1744_v18, %v1741_v42  ;;  %v1804_v58 = vadd.f32 %v1756_v46, %v1692_v26  ;;  %v4031_v11 = vld [vmem:[%s5700_s5 + $0x260] ss:$16 sps:$4 sm:$0xff]   ;;  %v4039_v16 = vld [vmem:[%s5700_s5 + $0x284] ss:$16 sps:$4 sm:$0xff]  }
 0x262   :  { %v4201_v21 = vpop.eup %4200  ;;  %v1786_v50 = vmul.f32 0.6931472, %v4199_v43  ;;  %v1765_v37 = vsel %vm5262_vm2, %v1762_v29, %v1759_v17  ;;  %v4042_v18 = vld [vmem:[%s5700_s5 + $0x28c] ss:$16 sps:$4 sm:$0xff]   ;;  %v4040_v25 = vld [vmem:[%s5700_s5 + $0x288] ss:$16 sps:$4 sm:$0xff]  }
 0x263   :  { %v1774_v49 = vsel %vm5268_vm3, %v1771_v30, %v1768_v4  ;;  %v1777_v22 = vmul.f32 0.6931472, %v4201_v21  ;;  %v4203_v57 = vpop.eup %4202  ;;  %v1805_v40 = vadd.f32 %v1765_v37, %v1693_v39  ;;  %v4019_v39 = vld [vmem:[%s5700_s5 + $0x220] ss:$16 sps:$4 sm:$0xff]   ;;  %v4045_v12 = vld [vmem:[%s5700_s5 + $0x2a4] ss:$16 sps:$4 sm:$0xff]  }
 0x264   :  { %v1806_v51 = vadd.f32 %v1774_v49, %v1694_v19  ;;  %v1792_v59 = vsel %vm5277_vm4, %v1789_v47, %v1786_v50  ;;  %v1795_v61 = vmul.f32 0.6931472, %v4203_v57  ;;  %v1803_v19 = vadd.f32 %v1747_v62, %v1691_v27  ;;  %v4048_v23 = vld [vmem:[%s5700_s5 + $0x2ac] ss:$16 sps:$4 sm:$0xff]   ;;  %v4043_v42 = vld [vmem:[%s5700_s5 + $0x2a0] ss:$16 sps:$4 sm:$0xff]  }
 0x265   :  { %v1808_v45 = vadd.f32 %v1792_v59, %v1696_v38  ;;  %v1783_v20 = vsel %vm1782_vm5, %v1780_v52, %v1777_v22  ;;  %v4022_v38 = vld [vmem:[%s5700_s5 + $0x228] ss:$16 sps:$4 sm:$0xff]   ;;  %v4051_v30 = vld [vmem:[%s5700_s5 + $0x2c4] ss:$16 sps:$4 sm:$0xff]   ;;  %v4049_v14 = vld [vmem:[%s5700_s5 + $0x2c0] ss:$16 sps:$4 sm:$0xff]  }
 0x266   :  { %v1810_v60 = vpack.c.bf16 %v1806_v51, %v1802_v53  ;;  %v1807_v63 = vadd.f32 %v1783_v20, %v1695_v24  ;;  %v1801_v1 = vsel %vm1800_vm6, %v1798_v7, %v1795_v61  ;;  %v4027_v24 = vld [vmem:[%s5700_s5 + $0x244] ss:$16 sps:$4 sm:$0xff]   ;;  %v4046_v29 = vld [vmem:[%s5700_s5 + $0x2a8] ss:$16 sps:$4 sm:$0xff]   ;;  %v4060_v41 = vld [vmem:[%s5700_s5 + $0x2ec] ss:$16 sps:$4 sm:$0xff]  }
 0x267   :  { %v5301_v26 = vpack.c.bf16 %v1808_v45, %v1804_v58  ;;  %v1809_v28 = vadd.f32 %v1801_v1, %v1697_v34  ;;  %v4052_v17 = vld [vmem:[%s5700_s5 + $0x2c8] ss:$16 sps:$4 sm:$0xff]   ;;  %v4057_v4 = vld [vmem:[%s5700_s5 + $0x2e4] ss:$16 sps:$4 sm:$0xff]   ;;  %v4055_v43 = vld [vmem:[%s5700_s5 + $0x2e0] ss:$16 sps:$4 sm:$0xff]  }
 0x268   :  { %v1811_v3 = vpack.c.bf16 %v1807_v63, %v1803_v19  ;;  %v4058_v46 = vld [vmem:[%s5700_s5 + $0x2e8] ss:$16 sps:$4 sm:$0xff]   ;;  %v4063_v47 = vld [vmem:[%s5700_s5 + $0x304] ss:$16 sps:$4 sm:$0xff]   ;;  %v4061_v13 = vld [vmem:[%s5700_s5 + $0x300] ss:$16 sps:$4 sm:$0xff]  }
 0x269   :  { %v1813_v27 = vpack.c.bf16 %v1809_v28, %v1805_v40  ;;  %v4064_v21 = vld [vmem:[%s5700_s5 + $0x308] ss:$16 sps:$4 sm:$0xff]   ;;  %v4069_v49 = vld [vmem:[%s5700_s5 + $0x324] ss:$16 sps:$4 sm:$0xff]   ;;  %v4072_v50 = vld [vmem:[%s5700_s5 + $0x32c] ss:$16 sps:$4 sm:$0xff]  }
 0x26a   :  { %2641 = vmatprep.mubr.bf16.mxu1 %v1811_v3  ;;  %2727 = vmatprep.mubr.bf16.mxu0 %v1811_v3  ;;  %v4067_v52 = vld [vmem:[%s5700_s5 + $0x320] ss:$16 sps:$4 sm:$0xff]   ;;  %v4070_v53 = vld [vmem:[%s5700_s5 + $0x328] ss:$16 sps:$4 sm:$0xff]   ;;  %v4075_v62 = vld [vmem:[%s5700_s5 + $0x344] ss:$16 sps:$4 sm:$0xff]  }
 0x26b   :  { %2642 = vmatmul.mubr.bf16.vlgmr.msra.gmra.mrb[12].mxu1 %v1810_v60  ;;  %2728 = vmatmul.mubr.bf16.vlgmr.msra.gmra.mrb[8].mxu0 %v1810_v60  ;;  %v4078_v51 = vld [vmem:[%s5700_s5 + $0x34c] ss:$16 sps:$4 sm:$0xff]   ;;  %v4073_v22 = vld [vmem:[%s5700_s5 + $0x340] ss:$16 sps:$4 sm:$0xff]   ;;  %v4076_v57 = vld [vmem:[%s5700_s5 + $0x348] ss:$16 sps:$4 sm:$0xff]  }
 0x26c   :  { %2653 = vmatpush1.bf16.msra.mxu1 %v4013_v44  ;;  %2739 = vmatpush1.bf16.msra.mxu0 %v4016_v35  ;;  %v4081_v58 = vld [vmem:[%s5700_s5 + $0x364] ss:$16 sps:$4 sm:$0xff]   ;;  %v4084_v37 = vld [vmem:[%s5700_s5 + $0x36c] ss:$16 sps:$4 sm:$0xff]   ;;  %v4079_v59 = vld [vmem:[%s5700_s5 + $0x360] ss:$16 sps:$4 sm:$0xff]  }
 0x26d   :  { %3547 = vmatprep.mubr.msk.bf16.mxu1 %vm2592_vm7, %v1813_v27  ;;  %3549 = vmatprep.mubr.msk.bf16.mxu0 %vm2592_vm7, %v1813_v27  ;;  %v4082_v7 = vld [vmem:[%s5700_s5 + $0x368] ss:$16 sps:$4 sm:$0xff]   ;;  %v4087_v60 = vld [vmem:[%s5700_s5 + $0x384] ss:$16 sps:$4 sm:$0xff]   ;;  %v4090_v45 = vld [vmem:[%s5700_s5 + $0x38c] ss:$16 sps:$4 sm:$0xff]  }
 0x26e   :  { %2654 = vmatprep.subr.bf16.mxu1 %v4021_v55  ;;  %2740 = vmatprep.subr.bf16.mxu0 %v4024_v36  ;;  %v4085_v20 = vld [vmem:[%s5700_s5 + $0x380] ss:$16 sps:$4 sm:$0xff]   ;;  %v4088_v61 = vld [vmem:[%s5700_s5 + $0x388] ss:$16 sps:$4 sm:$0xff]   ;;  %v4093_v19 = vld [vmem:[%s5700_s5 + $0x3a4] ss:$16 sps:$4 sm:$0xff]  }
 0x26f   :  { %v4096_v63 = vld [vmem:[%s5700_s5 + $0x3ac] ss:$16 sps:$4 sm:$0xff]   ;;  %v4091_v34 = vld [vmem:[%s5700_s5 + $0x3a0] ss:$16 sps:$4 sm:$0xff]   ;;  %v4094_v1 = vld [vmem:[%s5700_s5 + $0x3a8] ss:$16 sps:$4 sm:$0xff]  }
 0x270   :  { %2655 = vmatpush1.bf16.msra.mxu1 %v4019_v39  ;;  %2741 = vmatpush1.bf16.msra.mxu0 %v4022_v38  ;;  %v4099_v40 = vld [vmem:[%s5700_s5 + $0x3c4] ss:$16 sps:$4 sm:$0xff]   ;;  %v4102_v28 = vld [vmem:[%s5700_s5 + $0x3cc] ss:$16 sps:$4 sm:$0xff]   ;;  %v4097_v35 = vld [vmem:[%s5700_s5 + $0x3c0] ss:$16 sps:$4 sm:$0xff]  }
 0x271   :  { %2656 = vmatprep.subr.bf16.mxu1 %v4027_v24  ;;  %2742 = vmatprep.subr.bf16.mxu0 %v4030_v5  ;;  %v1938_v3 = vld [vmem:[%s5700_s5 + $0x3e0] sm:$0x33]  ;;  %v1939_v44 = vld [vmem:[%s5700_s5 + $0x3e8] sm:$0x33]  ;;  %vm3112_vm1 = vcmask 130048  }
 0x272   :  { %v4100_v27 = vld [vmem:[%s5700_s5 + $0x3c8] ss:$16 sps:$4 sm:$0xff]   ;;  %v3543_v55 = vcombine.high %v1938_v3, %v1938_v3  ;;  %v3545_v36 = vcombine.high %v1939_v44, %v1939_v44  ;;  %v3542_v39 = vcombine.low %v1938_v3, %v1938_v3  ;;  %v3544_v38 = vcombine.low %v1939_v44, %v1939_v44 }
 0x274   :  { %2657 = vmatpush1.bf16.msra.mxu1 %v4025_v6  ;;  %2743 = vmatpush1.bf16.msra.mxu0 %v4028_v54  ;;  %v2598_v24 = vsel %vm2596_vm8, %v3542_v39, 0  ;;  %v2604_v5 = vsel %vm2596_vm8, %v3544_v38, 0  ;;  %v4107_v6 = vld [vmem:[%s5702_s7 + $0x80] sm:$0xff]  }
 0x275   :  { %2658 = vmatprep.subr.bf16.mxu1 %v4033_v8  ;;  %2744 = vmatprep.subr.bf16.mxu0 %v4036_v9  ;;  %v4108_v54 = vld [vmem:[%s5702_s7 + $0x40] sm:$0xff]   ;;  %v4110_v9 = vld [vmem:[%s5702_s7 + $0x88] sm:$0xff]  }
 0x276   :  { %v4109_v8 = vld [vmem:[%s5702_s7] sm:$0xff]  }
 0x278   :  { %2659 = vmatpush1.bf16.msra.mxu1 %v4031_v11  ;;  %2745 = vmatpush1.bf16.msra.mxu0 %v4034_v10  ;;  %v4112_v11 = vld [vmem:[%s5702_s7 + $0x8] sm:$0xff]   ;;  %v4113_v10 = vld [vmem:[%s5702_s7 + $0x90] sm:$0xff]  }
 0x279   :  { %2660 = vmatprep.subr.bf16.mxu1 %v4039_v16  ;;  %2746 = vmatprep.subr.bf16.mxu0 %v4042_v18  ;;  %v4114_v16 = vld [vmem:[%s5702_s7 + $0x50] sm:$0xff]  }
 0x27a   :  { %v4115_v18 = vld [vmem:[%s5702_s7 + $0x10] sm:$0xff]  }
 0x27c   :  { %2661 = vmatpush1.bf16.msra.mxu1 %v4037_v15  ;;  %2747 = vmatpush1.bf16.msra.mxu0 %v4040_v25  ;;  %v4116_v15 = vld [vmem:[%s5702_s7 + $0x98] sm:$0xff]  }
 0x27d   :  { %2662 = vmatprep.subr.bf16.mxu1 %v4045_v12  ;;  %2748 = vmatprep.subr.bf16.mxu0 %v4048_v23  ;;  %v4117_v25 = vld [vmem:[%s5702_s7 + $0x58] sm:$0xff]   ;;  %v4119_v23 = vld [vmem:[%s5702_s7 + $0xa0] sm:$0xff]  }
 0x27e   :  { %v4118_v12 = vld [vmem:[%s5702_s7 + $0x18] sm:$0xff]  }
 0x280   :  { %2663 = vmatpush1.bf16.msra.mxu1 %v4043_v42  ;;  %2749 = vmatpush1.bf16.msra.mxu0 %v4046_v29  ;;  %v4120_v42 = vld [vmem:[%s5702_s7 + $0x60] sm:$0xff]  }
 0x281   :  { %2664 = vmatprep.subr.bf16.mxu1 %v4051_v30  ;;  %2750 = vmatprep.subr.bf16.mxu0 %v4054_v32  ;;  %v4121_v29 = vld [vmem:[%s5702_s7 + $0x20] sm:$0xff]   ;;  %v4122_v30 = vld [vmem:[%s5702_s7 + $0xa8] sm:$0xff]  }
 0x282   :  { %v4123_v32 = vld [vmem:[%s5702_s7 + $0x68] sm:$0xff]  }
 0x284   :  { %2665 = vmatpush1.bf16.msra.mxu1 %v4049_v14  ;;  %2751 = vmatpush1.bf16.msra.mxu0 %v4052_v17  ;;  %v4124_v14 = vld [vmem:[%s5702_s7 + $0x28] sm:$0xff]   ;;  %v4125_v17 = vld [vmem:[%s5702_s7 + $0xb0] sm:$0xff]  }
 0x285   :  { %2666 = vmatprep.subr.bf16.mxu1 %v4057_v4  ;;  %2752 = vmatprep.subr.bf16.mxu0 %v4060_v41  ;;  %v4126_v4 = vld [vmem:[%s5702_s7 + $0x70] sm:$0xff]  }
 0x286   :  { %v4127_v41 = vld [vmem:[%s5702_s7 + $0x30] sm:$0xff]  }
 0x288   :  { %2667 = vmatpush1.bf16.msra.mxu1 %v4055_v43  ;;  %2753 = vmatpush1.bf16.msra.mxu0 %v4058_v46  ;;  %v4128_v43 = vld [vmem:[%s5702_s7 + $0xb8] sm:$0xff]  }
 0x289   :  { %2668 = vmatprep.subr.bf16.mxu1 %v4063_v47  ;;  %2754 = vmatprep.subr.bf16.mxu0 %v4066_v48  ;;  %v4129_v46 = vld [vmem:[%s5702_s7 + $0x78] sm:$0xff]   ;;  %v4131_v48 = vld [vmem:[%s5702_s7 + $0xc0] sm:$0xff]  }
 0x28a   :  { %v4130_v47 = vld [vmem:[%s5702_s7 + $0x38] sm:$0xff]  }
 0x28c   :  { %2669 = vmatpush1.bf16.msra.mxu1 %v4061_v13  ;;  %2755 = vmatpush1.bf16.msra.mxu0 %v4064_v21  ;;  %v1940_v13 = vld [vmem:[%s5701_s6] sm:$0xf] }
 0x28d   :  { %2670 = vmatprep.subr.bf16.mxu1 %v4069_v49  ;;  %2756 = vmatprep.subr.bf16.mxu0 %v4072_v50  ;;  %v1945_v21 = vrot.slane %v1940_v13, %v4595_v31  ;;  %v1953_v49 = vrot.slane %v1940_v13, %v4616_v56  ;;  %v1957_v50 = vrot.slane %v1940_v13, %v4621_v0 }
 0x290   :  { %2671 = vmatpush1.bf16.msra.mxu1 %v4067_v52  ;;  %2757 = vmatpush1.bf16.msra.mxu0 %v4070_v53 }
 0x291   :  { %2672 = vmatprep.subr.bf16.mxu1 %v4075_v62  ;;  %2758 = vmatprep.subr.bf16.mxu0 %v4078_v51 }
 0x294   :  { %2673 = vmatpush1.bf16.msra.mxu1 %v4073_v22  ;;  %2759 = vmatpush1.bf16.msra.mxu0 %v4076_v57 }
 0x295   :  { %2674 = vmatprep.subr.bf16.mxu1 %v4081_v58  ;;  %2760 = vmatprep.subr.bf16.mxu0 %v4084_v37 }
 0x298   :  { %2675 = vmatpush1.bf16.msra.mxu1 %v4079_v59  ;;  %2761 = vmatpush1.bf16.msra.mxu0 %v4082_v7 }
 0x299   :  { %2676 = vmatprep.subr.bf16.mxu1 %v4087_v60  ;;  %2762 = vmatprep.subr.bf16.mxu0 %v4090_v45 }
 0x29c   :  { %2677 = vmatpush1.bf16.msra.mxu1 %v4085_v20  ;;  %2763 = vmatpush1.bf16.msra.mxu0 %v4088_v61 }
 0x29d   :  { %2678 = vmatprep.subr.bf16.mxu1 %v4093_v19  ;;  %2764 = vmatprep.subr.bf16.mxu0 %v4096_v63 }
 0x2a0   :  { %2679 = vmatpush1.bf16.msra.mxu1 %v4091_v34  ;;  %2765 = vmatpush1.bf16.msra.mxu0 %v4094_v1 }
 0x2a1   :  { %2680 = vmatprep.subr.bf16.mxu1 %v4099_v40  ;;  %2766 = vmatprep.subr.bf16.mxu0 %v4102_v28 }
 0x2a4   :  { %2681 = vmatpush1.bf16.msra.mxu1 %v4097_v35  ;;  %2767 = vmatpush1.bf16.msra.mxu0 %v4100_v27 }
 0x2a5   :  { %3546 = vmatprep.subr.msk.bf16.mxu1 %vm2596_vm8, %v3543_v55  ;;  %3548 = vmatprep.subr.msk.bf16.mxu0 %vm2596_vm8, %v3545_v36 }
 0x2a8   :  { %2683 = vmatpush1.bf16.msra.mxu1 %v2598_v24  ;;  %2769 = vmatpush1.bf16.msra.mxu0 %v2604_v5 }
 0x2a9   :  { %3157 = vmatprep.subr.bf16.mxu0 %v4268_v2  ;;  %3582 = vmatprep.subr.bf16.mxu1 %v4108_v54 }
 0x2ab   :  { %2685 = vmatmul.mubr.bf16.vlgmr.msra.gmra.mrb[12].mxu1 %v5301_v26  ;;  %2771 = vmatmul.mubr.bf16.vlgmr.msra.gmra.mrb[8].mxu0 %v5301_v26  ;;  %v4111_v26 = vld [vmem:[%s5702_s7 + $0x48] sm:$0xff]  }
 0x2ac   :  { %3158 = vmatpush1.bf16.msra.mxu0 %v4107_v6  ;;  %3583 = vmatpush3.bf16.msra.mxu1 %v4109_v8 }
 0x2ad   :  { %3159 = vmatprep.subr.bf16.mxu0 %v4268_v2  ;;  %3584 = vmatprep.subr.bf16.mxu1 %v4111_v26 }
 0x2b0   :  { %3160 = vmatpush1.bf16.msra.mxu0 %v4110_v9  ;;  %3585 = vmatpush3.bf16.msra.mxu1 %v4112_v11 }
 0x2b1   :  { %3161 = vmatprep.subr.bf16.mxu0 %v4268_v2  ;;  %3586 = vmatprep.subr.bf16.mxu1 %v4114_v16 }
 0x2b4   :  { %3162 = vmatpush1.bf16.msra.mxu0 %v4113_v10  ;;  %3587 = vmatpush3.bf16.msra.mxu1 %v4115_v18 }
 0x2b5   :  { %3163 = vmatprep.subr.bf16.mxu0 %v4268_v2  ;;  %3588 = vmatprep.subr.bf16.mxu1 %v4117_v25 }
 0x2b8   :  { %3164 = vmatpush1.bf16.msra.mxu0 %v4116_v15  ;;  %3589 = vmatpush3.bf16.msra.mxu1 %v4118_v12 }
 0x2b9   :  { %3165 = vmatprep.subr.bf16.mxu0 %v4268_v2  ;;  %3590 = vmatprep.subr.bf16.mxu1 %v4120_v42 }
 0x2bc   :  { %3166 = vmatpush1.bf16.msra.mxu0 %v4119_v23  ;;  %3591 = vmatpush3.bf16.msra.mxu1 %v4121_v29 }
 0x2bd   :  { %3167 = vmatprep.subr.bf16.mxu0 %v4268_v2  ;;  %3592 = vmatprep.subr.bf16.mxu1 %v4123_v32 }
 0x2c0   :  { %3168 = vmatpush1.bf16.msra.mxu0 %v4122_v30  ;;  %3593 = vmatpush3.bf16.msra.mxu1 %v4124_v14 }
 0x2c1   :  { %3169 = vmatprep.subr.bf16.mxu0 %v4268_v2  ;;  %3594 = vmatprep.subr.bf16.mxu1 %v4126_v4 }
 0x2c4   :  { %3170 = vmatpush1.bf16.msra.mxu0 %v4125_v17  ;;  %3595 = vmatpush3.bf16.msra.mxu1 %v4127_v41 }
 0x2c5   :  { %3171 = vmatprep.subr.bf16.mxu0 %v4268_v2  ;;  %3596 = vmatprep.subr.bf16.mxu1 %v4129_v46 }
 0x2c8   :  { %3172 = vmatpush1.bf16.msra.mxu0 %v4128_v43  ;;  %3597 = vmatpush3.bf16.msra.mxu1 %v4130_v47 }
 0x2c9   :  { %3173 = vmatprep.subr.bf16.mxu0 %v4268_v2  ;;  %v1949_v2 = vrot.slane %v1940_v13, %v4600_v33 }
 0x2cc   :  { %3174 = vmatpush1.bf16.msra.mxu0 %v4131_v48 }
 0x37e   :  { %v2686_v52 = vpop.f32.mrb[12].mxu1  ;;  %v2772_v53 = vpop.f32.mrb[8].mxu0 }
 0x37f   :  { %v5578_v62 = vadd.f32 %v2686_v52, %v1945_v21  ;;  %v5580_v51 = vadd.f32 %v2772_v53, %v1953_v49  ;;  %v2688_v22 = vpop.f32.mrb[13].mxu1  ;;  %v2774_v57 = vpop.f32.mrb[9].mxu0 }
 0x380   :  { %v5582_v58 = vadd.f32 %v2688_v22, %v1949_v2  ;;  %v5584_v37 = vadd.f32 %v2774_v57, %v1957_v50  ;;  %v2690_v59 = vpop.f32.mrb[14].mxu1  ;;  %v2776_v31 = vpop.f32.mrb[10].mxu0 }
 0x381   :  { %v2789_v56 = vand.u32 2147483647, %v5578_v62  ;;  %v2791_v33 = vand.u32 2147483647, %v5580_v51  ;;  %v5590_v20 = vadd.f32 %v2690_v59, %v1945_v21  ;;  %v5592_v61 = vadd.f32 %v2776_v31, %v1953_v49  ;;  %v2692_v19 = vpop.f32.mrb[15].mxu1  ;;  %v2778_v63 = vpop.f32.mrb[11].mxu0 }
 0x382   :  { %v2790_v0 = vand.u32 2147483647, %v5582_v58  ;;  %v2792_v7 = vand.u32 2147483647, %v5584_v37  ;;  %v5594_v40 = vadd.f32 %v2692_v19, %v1949_v2  ;;  %v5596_v28 = vadd.f32 %v2778_v63, %v1957_v50 }
 0x383   :  { %v2797_v60 = vsub.f32 0.0, %v2789_v56  ;;  %v2799_v45 = vsub.f32 0.0, %v2791_v33  ;;  %v2793_v55 = vand.u32 2147483647, %v5590_v20  ;;  %v2795_v36 = vand.u32 2147483647, %v5592_v61 }
 0x384   :  { %v2798_v34 = vsub.f32 0.0, %v2790_v0  ;;  %v2800_v1 = vsub.f32 0.0, %v2792_v7  ;;  %v2794_v39 = vand.u32 2147483647, %v5594_v40  ;;  %v2796_v24 = vand.u32 2147483647, %v5596_v28 }
 0x385   :  { %v2805_v3 = vmul.f32 1.442695, %v2797_v60  ;;  %v2809_v44 = vmul.f32 1.442695, %v2799_v45  ;;  %v2801_v38 = vsub.f32 0.0, %v2793_v55  ;;  %v2803_v5 = vsub.f32 0.0, %v2795_v36 }
 0x386   :  { %v2807_v35 = vmul.f32 1.442695, %v2798_v34  ;;  %v2811_v27 = vmul.f32 1.442695, %v2800_v1  ;;  %v2802_v6 = vsub.f32 0.0, %v2794_v39  ;;  %v2804_v8 = vsub.f32 0.0, %v2796_v24 }
 0x387   :  { %4204 = vpow2.f32 %v2805_v3  ;;  %v2813_v54 = vmul.f32 1.442695, %v2801_v38  ;;  %v2817_v9 = vmul.f32 1.442695, %v2803_v5  ;;  %v2781_v14 = vmax.f32 %v5578_v62, 0.0 }
 0x388   :  { %4206 = vpow2.f32 %v2809_v44  ;;  %v2815_v26 = vmul.f32 1.442695, %v2802_v6  ;;  %v2819_v11 = vmul.f32 1.442695, %v2804_v8  ;;  %v2783_v41 = vmax.f32 %v5580_v51, 0.0 }
 0x389   :  { %4208 = vpow2.f32 %v2807_v35  ;;  %v2782_v43 = vmax.f32 %v5582_v58, 0.0  ;;  %v2784_v46 = vmax.f32 %v5584_v37, 0.0  ;;  %v2785_v2 = vmax.f32 %v5590_v20, 0.0  ;;  %v3550_v58 = vld [vmem:[%s5703_s8] ss:$0 sm:$0xff]  ;;  %s4271_s8 = smov [#allocation2]  }
 0x38a   :  { %4210 = vpow2.f32 %v2811_v27  ;;  %v2787_v50 = vmax.f32 %v5592_v61, 0.0  ;;  %v2786_v45 = vmax.f32 %v5594_v40, 0.0  ;;  %v2788_v51 = vmax.f32 %v5596_v28, 0.0  ;;  %s3225_s22 = sshll.u32 %s4271_s8, 4  ;;  %s3226_s22 = int_to_ptr.vmem [resolvable:$true] %s3225_s22 }
 0x38b   :  { %4212 = vpow2.f32 %v2813_v54  ;;  %s4244_s23 = scalar_lea.vmem %s3226_s22, 256  ;;  %p4249_p1 = scmp.lt.s32.totalorder %s3226_s22, %s3226_s22 }
 0x38c   :  { %4214 = vpow2.f32 %v2817_v9  ;;  %p4245_p0 = scmp.ne.s32.totalorder %s3226_s22, %s4244_s23  ;;  %p4250_p2 = scmp.lt.s32.totalorder %s4244_s23, %s4244_s23 }
 0x38d   :  { %4216 = vpow2.f32 %v2815_v26 }
 0x38e   :  { %4218 = vpow2.f32 %v2819_v11  ;;  %p4251_p3 = por %p4250_p2, %p4249_p1 }
 0x390   :  { %p4252_p4 = pnand %p4251_p3, %p4245_p0 }
 0x391   :  { %v4205_v10 = vpop.eup %4204 }
 0x392   :  { %v4207_v16 = vpop.eup %4206  ;;  %v2821_v18 = vadd.f32 1.0, %v4205_v10  ;;  %v2824_v4 = vmul.f32 -0.5, %v4205_v10  ;;  %v2827_v48 = vand.u32 2147483647, %v4205_v10 }
 0x393   :  { %v4209_v15 = vpop.eup %4208  ;;  %v2839_v25 = vadd.f32 1.0, %v4207_v16  ;;  %v2842_v13 = vmul.f32 -0.5, %v4207_v16  ;;  %v2845_v53 = vand.u32 2147483647, %v4207_v16 }
 0x394   :  { %v5602_v12 = vpop.eup %4210  ;;  %4220 = vlog2.f32 %v2821_v18  ;;  %v2830_v23 = vadd.f32 1.0, %v4209_v15  ;;  %v2833_v49 = vmul.f32 -0.5, %v4209_v15  ;;  %v2825_v59 = vadd.f32 1.0, %v2824_v4 }
 0x395   :  { %4222 = vlog2.f32 %v2839_v25  ;;  %v4213_v42 = vpop.eup %4212  ;;  %v2848_v29 = vadd.f32 1.0, %v5602_v12  ;;  %v2851_v22 = vmul.f32 -0.5, %v5602_v12  ;;  %v2836_v31 = vand.u32 2147483647, %v4209_v15 }
 0x396   :  { %v5605_v30 = vpop.eup %4214  ;;  %4224 = vlog2.f32 %v2830_v23  ;;  %v2857_v17 = vadd.f32 1.0, %v4213_v42  ;;  %v2860_v57 = vmul.f32 -0.5, %v4213_v42  ;;  %vm5621_vm9 = vcmp.lt.f32.partialorder %v2827_v48, 0.0004427343 }
 0x397   :  { %v5607_v32 = vpop.eup %4216  ;;  %4226 = vlog2.f32 %v2848_v29  ;;  %v2875_v21 = vadd.f32 1.0, %v5605_v30  ;;  %v2843_v7 = vadd.f32 1.0, %v2842_v13  ;;  %v2878_v60 = vmul.f32 -0.5, %v5605_v30 }
 0x398   :  { %v5613_v47 = vpop.eup %4218  ;;  %4228 = vlog2.f32 %v2857_v17  ;;  %v2866_v52 = vadd.f32 1.0, %v5607_v32  ;;  %v2834_v19 = vadd.f32 1.0, %v2833_v49  ;;  %v2854_v63 = vand.u32 2147483647, %v5602_v12 }
 0x399   :  { %4230 = vlog2.f32 %v2875_v21  ;;  %v2884_v56 = vadd.f32 1.0, %v5613_v47  ;;  %v2869_v34 = vmul.f32 -0.5, %v5607_v32  ;;  %vm5629_vm10 = vcmp.lt.f32.partialorder %v2845_v53, 0.0004427343 }
 0x39a   :  { %4232 = vlog2.f32 %v2866_v52  ;;  %v2852_v3 = vadd.f32 1.0, %v2851_v22  ;;  %v2861_v44 = vadd.f32 1.0, %v2860_v57  ;;  %v2863_v35 = vand.u32 2147483647, %v4213_v42 }
 0x39b   :  { %4234 = vlog2.f32 %v2884_v56  ;;  %v2826_v36 = vmul.f32 %v4205_v10, %v2825_v59  ;;  %vm5633_vm11 = vcmp.lt.f32.partialorder %v2836_v31, 0.0004427343  ;;  %v2887_v40 = vmul.f32 -0.5, %v5613_v47 }
 0x39c   :  { %v2844_v5 = vmul.f32 %v4207_v16, %v2843_v7  ;;  %v2879_v6 = vadd.f32 1.0, %v2878_v60  ;;  %v2881_v54 = vand.u32 2147483647, %v5605_v30  ;;  %v2835_v8 = vmul.f32 %v4209_v15, %v2834_v19 }
 0x39d   :  { %vm5639_vm12 = vcmp.lt.f32.partialorder %v2854_v63, 0.0004427343  ;;  %v2870_v26 = vadd.f32 1.0, %v2869_v34  ;;  %v2872_v11 = vand.u32 2147483647, %v5607_v32  ;;  %v2853_v25 = vmul.f32 %v5602_v12, %v2852_v3 }
 0x39e   :  { %v4221_v33 = vpop.eup %4220  ;;  %v2862_v23 = vmul.f32 %v4213_v42, %v2861_v44  ;;  %vm5645_vm13 = vcmp.lt.f32.partialorder %v2863_v35, 0.0004427343  ;;  %v2888_v4 = vadd.f32 1.0, %v2887_v40  ;;  %v2880_v21 = vmul.f32 %v5605_v30, %v2879_v6 }
 0x39f   :  { %v4223_v20 = vpop.eup %4222  ;;  %v2823_v55 = vmul.f32 0.6931472, %v4221_v33  ;;  %vm5654_vm14 = vcmp.lt.f32.partialorder %v2881_v54, 0.0004427343  ;;  %v2890_v12 = vand.u32 2147483647, %v5613_v47  ;;  %v2871_v22 = vmul.f32 %v5607_v32, %v2870_v26 }
 0x3a0   :  { %v4225_v27 = vpop.eup %4224  ;;  %v2841_v24 = vmul.f32 0.6931472, %v4223_v20  ;;  %vm2873_vm15 = vcmp.lt.f32.partialorder %v2872_v11, 0.0004427343  ;;  %v2889_v32 = vmul.f32 %v5613_v47, %v2888_v4 }
 0x3a1   :  { %v4227_v38 = vpop.eup %4226  ;;  %v2832_v18 = vmul.f32 0.6931472, %v4225_v27  ;;  %v2829_v16 = vsel %vm5621_vm9, %v2826_v36, %v2823_v55  ;;  %vm2891_vm0 = vcmp.lt.f32.partialorder %v2890_v12, 0.0004427343 }
 0x3a2   :  { %v4229_v10 = vpop.eup %4228  ;;  %v2850_v15 = vmul.f32 0.6931472, %v4227_v38  ;;  %v2847_v13 = vsel %vm5629_vm10, %v2844_v5, %v2841_v24  ;;  %v2893_v57 = vadd.f32 %v2829_v16, %v2781_v14 }
 0x3a3   :  { %v2859_v17 = vmul.f32 0.6931472, %v4229_v10  ;;  %v4231_v48 = vpop.eup %4230  ;;  %v2838_v30 = vsel %vm5633_vm11, %v2835_v8, %v2832_v18  ;;  %v2895_v33 = vadd.f32 %v2847_v13, %v2783_v41 }
 0x3a4   :  { %v4233_v42 = vpop.eup %4232  ;;  %v2877_v53 = vmul.f32 0.6931472, %v4231_v48  ;;  %v2856_v0 = vsel %vm5639_vm12, %v2853_v25, %v2850_v15 }
 0x3a5   :  { %v2865_v52 = vsel %vm5645_vm13, %v2862_v23, %v2859_v17  ;;  %v2868_v31 = vmul.f32 0.6931472, %v4233_v42  ;;  %v4235_v56 = vpop.eup %4234  ;;  %v2896_v34 = vadd.f32 %v2856_v0, %v2784_v46 }
 0x3a6   :  { %v2897_v59 = vadd.f32 %v2865_v52, %v2785_v2  ;;  %v2883_v7 = vsel %vm5654_vm14, %v2880_v21, %v2877_v53  ;;  %v2886_v20 = vmul.f32 0.6931472, %v4235_v56  ;;  %v2894_v2 = vadd.f32 %v2838_v30, %v2782_v43 }
 0x3a7   :  { %v2899_v62 = vadd.f32 %v2883_v7, %v2787_v50  ;;  %v2874_v14 = vsel %vm2873_vm15, %v2871_v22, %v2868_v31 }
 0x3a8   :  { %v2901_v60 = vpack.c.bf16 %v2897_v59, %v2893_v57  ;;  %v2898_v19 = vadd.f32 %v2874_v14, %v2786_v45  ;;  %v2892_v63 = vsel %vm2891_vm0, %v2889_v32, %v2886_v20 }
 0x3a9   :  { %v2903_v41 = vpack.c.bf16 %v2899_v62, %v2895_v33  ;;  %v2900_v1 = vadd.f32 %v2892_v63, %v2788_v51 }
 0x3aa   :  { %v2902_v47 = vpack.c.bf16 %v2898_v19, %v2894_v2 }
 0x3ab   :  { %v2904_v3 = vpack.c.bf16 %v2900_v1, %v2896_v34 }
 0x3ac   :  { %3148 = vmatprep.mubr.bf16.mxu1 %v2902_v47 }
 0x3ad   :  { %3149 = vmatmul.mubr.bf16.vlgmr.msra.gmra.mrb[16].mxu1 %v2901_v60  ;;  %3576 = vmatprep.mubr.msk.bf16.mxu0 %vm3112_vm1, %v2904_v3 }
 0x3ae   :  { %3190 = vmatmul.mubr.bf16.vlgmr.msra.gmra.mrb[12].mxu0 %v2903_v41 }
 0x480   :  { %v3598_v61 = vpop.f32.mrb[16].mxu1 }
 0x481   :  { %v3599_v28 = vpop.f32.mrb[17].mxu1  ;;  %v3191_v43 = vpop.f32.mrb[12].mxu0 }
 0x482   :  { %v3600_v50 = vadd.f32 %v3599_v28, %v3598_v61  ;;  %v3601_v45 = vpop.f32.mrb[18].mxu1  ;;  %v3193_v44 = vpop.f32.mrb[13].mxu0 }
 0x483   :  { %v3602_v37 = vpop.f32.mrb[19].mxu1  ;;  %v3194_v35 = vpop.f32.mrb[14].mxu0 }
 0x484   :  { %v3151_v46 = vadd.f32 %v3600_v50, %v3550_v58  ;;  %v3603_v27 = vadd.f32 %v3602_v37, %v3601_v45  ;;  %v3196_v55 = vpop.f32.mrb[15].mxu0 }
 0x486   :  { %v3154_v36 = vadd.f32 %v3603_v27, %v3550_v58  ;;  %v3192_v39 = vadd.f32 %v3191_v43, %v3151_v46 }
 0x488   :  { %3198 = vmax.xlane.f32.xlu0 %v3192_v39  ;;  %v3195_v40 = vadd.f32 %v3194_v35, %v3154_v36 }
 0x48c   :  { %3200 = vmax.xlane.f32.xlu0 %v3195_v40 }
 0x515   :  { %v3199_v38 = vpop.xlane.xlu0 %3198 }
 0x516   :  { %v3202_v24 = vsub.f32 %v3192_v39, %v3199_v38 }
 0x518   :  { %v3204_v5 = vmul.f32 1.442695, %v3202_v24 }
 0x519   :  { %v3201_v6 = vpop.xlane.xlu0 %3200 }
 0x51a   :  { %v3203_v54 = vsub.f32 %v3195_v40, %v3201_v6  ;;  %4236 = vpow2.f32 %v3204_v5 }
 0x51c   :  { %v3206_v8 = vmul.f32 1.442695, %v3203_v54 }
 0x51e   :  { %4238 = vpow2.f32 %v3206_v8 }
 0x524   :  { %v4237_v9 = vpop.eup %4236 }
 0x525   :  { %3208 = vadd.xlane.f32.xlu1 %v4237_v9 }
 0x528   :  { %v4239_v26 = vpop.eup %4238 }
 0x529   :  { %3210 = vadd.xlane.f32.xlu1 %v4239_v26 }
 0x5b2   :  { %v3209_v11 = vpop.xlane.xlu1 %3208 }
 0x5b3   :  { %4240 = vlog2.f32 %v3209_v11 }
 0x5b6   :  { %v3211_v10 = vpop.xlane.xlu1 %3210 }
 0x5b7   :  { %4242 = vlog2.f32 %v3211_v10 }
 0x5bd   :  { %v4241_v18 = vpop.eup %4240 }
 0x5be   :  { %v3213_v25 = vmul.f32 0.6931472, %v4241_v18 }
 0x5c0   :  { %v3216_v23 = vsub.f32 %v3202_v24, %v3213_v25 }
 0x5c1   :  { %v4243_v29 = vpop.eup %4242 }
 0x5c2   :  { %3218 = vst [vmem:[#allocation2] sm:$0xff] %v3216_v23  ;;  %v3215_v16 = vmul.f32 0.6931472, %v4243_v29 }
 0x5c4   :  { %v3217_v15 = vsub.f32 %v3203_v54, %v3215_v16 }
 0x5c6   :  { %3219 = vst [vmem:[#allocation2 + $0x8] sm:$0xff] %v3217_v15 }
 0x5c7   :  { %4255 = shalt.err (!%p4252_p4)
}
 0x5c8   :  { %s4256_s2 = scalar_lea.hbm %s5704_s9, 256 }
 0x5c9   :  { %p4257_p5 = scmp.ne.s32.totalorder %s5704_s9, %s4256_s2  ;;  %p4260_p6 = scmp.lt.u32.totalorder %s4256_s2, %s5704_s9 }
 0x5cb   :  { %p4262_p7 = pnand %p4260_p6, %p4257_p5 }
 0x5cd   :  { %4265 = shalt.err (!%p4262_p7)
}
 0x5ce   :  { %s4272_s28 = smov 128   ;;  %s4273_s29 = smov 8  }
 0x5cf   :  { %3231 = dma.vmem_to_hbm [thread:$0]  %s3226_s22, 256, %s5704_s9, [#allocation3], %s4272_s28, %s4272_s28, %s4273_s29  }
 0x5d0   :  { %4266 = dma.done.wait [#allocation3], 256  }
 0x5d1   :  { %4267 = vsyncadd [#allocation3], 4294967040 }
 0x5d2   :  { %3235 = vsyncpa [#allocation3], 1 }

</bundles_post_ra>
